<compile_context>
chip_gen: v7x
topology: tpu7x:2x2x1
jax: 0.10.0
libtpu: 0.0.40
codegen_flags: <defaults>
</compile_context>

<pallas_src>
import jax
import jax.numpy as jnp
from jax.experimental import pallas as pl
from jax.experimental.pallas import tpu as pltpu

HIDDEN = 2048  # the module's `M`


def _round_up(x, m):
    return ((x + m - 1) // m) * m


def mfld_kernel(x_ref, w1_ref, b1_ref, w2_ref, b2_ref, o_ref):
    # fc1: (bt, D_in) @ (D_in, M) + b1, ReLU. f32 accumulation on the MXU.
    h = jnp.dot(x_ref[...], w1_ref[...], preferred_element_type=jnp.float32)
    h = jnp.maximum(h + b1_ref[...], 0.0)          # b1 is (1, M), broadcasts over rows
    # fc2: (bt, M) @ (M, D_out) + b2. The module's 1/M scale is pre-folded into w2/b2.
    y = jnp.dot(h, w2_ref[...], preferred_element_type=jnp.float32)
    o_ref[...] = (y + b2_ref[...]).astype(o_ref.dtype)


def mfld_forward(x, w1, b1, w2, b2, *, block_batch=256):
    """Forward pass. w2/b2 must already carry the folded 1/M scale."""
    B, d_in = x.shape
    d_out = w2.shape[1]

    # Pick a batch tile: multiple of 8 (sublane alignment), at most `block_batch`,
    # and never larger than the (rounded-up) batch itself.
    bt = min(_round_up(block_batch, 8), _round_up(B, 8))
    B_pad = _round_up(B, bt)
    if B_pad != B:
        x = jnp.pad(x, ((0, B_pad - B), (0, 0)))    # zero rows; discarded after the call
    grid = (B_pad // bt,)

    # Explicit VMEM budget: weights (worst-case double-buffered) + double-buffered
    # x/out tiles + the (bt, M) f32 intermediate, with headroom, capped under v7x's 64 MiB.
    f32 = 4
    weight_bytes = (d_in * HIDDEN + HIDDEN * d_out + HIDDEN + d_out) * f32
    io_bytes = 2 * bt * (d_in + d_out) * f32
    act_bytes = 2 * bt * HIDDEN * f32
    est = 2 * weight_bytes + io_bytes + act_bytes
    vmem_limit = min(60 << 20, max(32 << 20, int(est * 1.25) + (2 << 20)))

    def build(weight_pipeline_mode):
        def wspec(shape):
            if weight_pipeline_mode is None:
                return pl.BlockSpec(shape, lambda i: (0, 0))
            return pl.BlockSpec(shape, lambda i: (0, 0),
                                pipeline_mode=weight_pipeline_mode)

        return pl.pallas_call(
            mfld_kernel,
            out_shape=jax.ShapeDtypeStruct((B_pad, d_out), jnp.float32),
            grid_spec=pltpu.PrefetchScalarGridSpec(
                num_scalar_prefetch=0,
                grid=grid,
                in_specs=[
                    pl.BlockSpec((bt, d_in), lambda i: (i, 0)),  # x tile (pipelined)
                    wspec((d_in, HIDDEN)),                       # w1 (VMEM-resident)
                    wspec((1, HIDDEN)),                          # b1
                    wspec((HIDDEN, d_out)),                      # w2
                    wspec((1, d_out)),                           # b2
                ],
                out_specs=pl.BlockSpec((bt, d_out), lambda i: (i, 0)),
            ),
            compiler_params=pltpu.CompilerParams(
                dimension_semantics=("parallel",),
                vmem_limit_bytes=vmem_limit,
            ),
        )

    try:
        # Weights/biases never change across grid steps -> single-buffer them.
        out = build(pl.Buffered(1))(x, w1, b1, w2, b2)
    except Exception:
        # Fallback for jax versions without per-BlockSpec buffer counts on the
        # top-level pallas_call pipeline: default double-buffering (still correct).
        out = build(None)(x, w1, b1, w2, b2)

    return out[:B]


def fold_output_scale(w2, b2):
    """One-time param transform: fold the module's trailing `/ M` into fc2."""
    inv_m = 1.0 / HIDDEN
    return w2 * inv_m, b2 * inv_m


def init_params(key, input_size, output_size):
    """Deterministic synthetic params matching nn.Linear shapes (transposed)."""
    k1, k2, k3, k4 = jax.random.split(key, 4)
    # PyTorch fc1.weight is (M, input_size); we store w1 = fc1.weight.T
    w1 = jax.random.normal(k1, (input_size, HIDDEN), jnp.float32) * (1.0 / jnp.sqrt(input_size))
    b1 = jax.random.normal(k2, (1, HIDDEN), jnp.float32) * 0.01
    # PyTorch fc2.weight is (output_size, M); we store w2 = fc2.weight.T
    w2 = jax.random.normal(k3, (HIDDEN, output_size), jnp.float32) * (1.0 / jnp.sqrt(HIDDEN))
    b2 = jax.random.normal(k4, (1, output_size), jnp.float32) * 0.01
    # NOTE: on v6e/v7x, storing w1/w2 (and x) in bfloat16 with f32 accumulation
    # would halve weight DMA/VMEM and hit the fast MXU path; kept f32 here for an
    # exact check against the f32 reference.
    return w1, b1, w2, b2


if __name__ == "__main__":
    key = jax.random.PRNGKey(0)
    kx, kp, kx2 = jax.random.split(key, 3)

    input_size, output_size = 32, 8
    w1, b1, w2, b2 = init_params(kp, input_size, output_size)
    w2f, b2f = fold_output_scale(w2, b2)

    def reference(x):
        return (jnp.maximum(x @ w1 + b1, 0.0) @ w2 + b2) / HIDDEN

    # Small shape matching the module's scale (batch=8, in=32, out=8).
    x_small = jax.random.normal(kx, (8, input_size), jnp.float32)
    out_small = jax.block_until_ready(mfld_forward(x_small, w1, b1, w2f, b2f))
    assert out_small.shape == (8, output_size)
    assert jnp.allclose(out_small, reference(x_small), atol=1e-5, rtol=1e-4), "small-case mismatch"

    # Larger, non-divisible batch: exercises zero-padding, a multi-step grid,
    # the software pipeline and the megacore-parallel batch axis.
    x_big = jax.random.normal(kx2, (300, input_size), jnp.float32)
    out_big = jax.block_until_ready(
        mfld_forward(x_big, w1, b1, w2f, b2f, block_batch=128))
    assert out_big.shape == (300, output_size)
    assert jnp.allclose(out_big, reference(x_big), atol=1e-5, rtol=1e-4), "big-case mismatch"

    print("KERNEL_OK")
</pallas_src>

<mosaic_0001>
module attributes {stable_mosaic.version = 11 : i64} {
  func.func @mfld_kernel(%arg0: i32, %arg1: memref<8x32xf32, #tpu.memory_space<vmem>>, %arg2: memref<32x2048xf32, #tpu.memory_space<vmem>>, %arg3: memref<1x2048xf32, #tpu.memory_space<vmem>>, %arg4: memref<2048x8xf32, #tpu.memory_space<vmem>>, %arg5: memref<1x8xf32, #tpu.memory_space<vmem>>, %arg6: memref<8x8xf32, #tpu.memory_space<vmem>>) attributes {dimension_semantics = [#tpu.dimension_semantics<parallel>], iteration_bounds = array<i64: 1>, scalar_prefetch = 0 : i64, scratch_operands = 0 : i64, tpu.core_type = #tpu.core_type<tc>, window_params = [{transform_indices = @transform_0, window_bounds = array<i64: 8, 32>}, {pipeline_mode = #tpu.pipeline_mode<synchronous>, transform_indices = @transform_1, window_bounds = array<i64: 32, 2048>}, {pipeline_mode = #tpu.pipeline_mode<synchronous>, transform_indices = @transform_2, window_bounds = array<i64: 1, 2048>}, {pipeline_mode = #tpu.pipeline_mode<synchronous>, transform_indices = @transform_3, window_bounds = array<i64: 2048, 8>}, {pipeline_mode = #tpu.pipeline_mode<synchronous>, transform_indices = @transform_4, window_bounds = array<i64: 1, 8>}, {transform_indices = @transform_5, window_bounds = array<i64: 8, 8>}]} {
    %c0 = arith.constant 0 : index
    %c0_0 = arith.constant 0 : index
    %0 = vector.load %arg1[%c0, %c0_0] : memref<8x32xf32, #tpu.memory_space<vmem>>, vector<8x32xf32>
    %c0_1 = arith.constant 0 : index
    %c0_2 = arith.constant 0 : index
    %1 = vector.load %arg2[%c0_1, %c0_2] : memref<32x2048xf32, #tpu.memory_space<vmem>>, vector<32x2048xf32>
    %cst = arith.constant dense<0.000000e+00> : vector<8x2048xf32>
    %2 = tpu.matmul %0, %1, %cst {dimension_numbers = #tpu.dot_dimension_numbers<[1], [0], [0], [1], [0, 0, 1, 1], [], []>} : vector<8x32xf32>, vector<32x2048xf32>, vector<8x2048xf32> -> vector<8x2048xf32>
    %c0_3 = arith.constant 0 : index
    %c0_4 = arith.constant 0 : index
    %3 = vector.load %arg3[%c0_3, %c0_4] : memref<1x2048xf32, #tpu.memory_space<vmem>>, vector<1x2048xf32>
    %4 = vector.broadcast %3 : vector<1x2048xf32> to vector<8x2048xf32>
    %5 = arith.addf %2, %4 : vector<8x2048xf32>
    %cst_5 = arith.constant 0.000000e+00 : f32
    %6 = vector.broadcast %cst_5 : f32 to vector<8x2048xf32>
    %7 = arith.maximumf %5, %6 : vector<8x2048xf32>
    %c0_6 = arith.constant 0 : index
    %c0_7 = arith.constant 0 : index
    %8 = vector.load %arg4[%c0_6, %c0_7] : memref<2048x8xf32, #tpu.memory_space<vmem>>, vector<2048x8xf32>
    %cst_8 = arith.constant dense<0.000000e+00> : vector<8x8xf32>
    %9 = tpu.matmul %7, %8, %cst_8 {dimension_numbers = #tpu.dot_dimension_numbers<[1], [0], [0], [1], [0, 0, 1, 1], [], []>} : vector<8x2048xf32>, vector<2048x8xf32>, vector<8x8xf32> -> vector<8x8xf32>
    %c0_9 = arith.constant 0 : index
    %c0_10 = arith.constant 0 : index
    %10 = vector.load %arg5[%c0_9, %c0_10] : memref<1x8xf32, #tpu.memory_space<vmem>>, vector<1x8xf32>
    %11 = vector.broadcast %10 : vector<1x8xf32> to vector<8x8xf32>
    %12 = arith.addf %9, %11 : vector<8x8xf32>
    %c0_11 = arith.constant 0 : index
    %c0_12 = arith.constant 0 : index
    %13 = vector.load %arg6[%c0_11, %c0_12] : memref<8x8xf32, #tpu.memory_space<vmem>>, vector<8x8xf32>
    tpu.vector_store %arg6[%c0_11, %c0_12], %12 {strides = array<i32>} : memref<8x8xf32, #tpu.memory_space<vmem>>, vector<8x8xf32>,
    return
  }
  func.func @transform_0(%arg0: i32) -> (i32, i32) {
    %c0_i32 = arith.constant 0 : i32
    %c0_i32_0 = arith.constant 0 : i32
    return %arg0, %c0_i32 : i32, i32
  }
  func.func @transform_1(%arg0: i32) -> (i32, i32) {
    %c0_i32 = arith.constant 0 : i32
    %c0_i32_0 = arith.constant 0 : i32
    %c0_i32_1 = arith.constant 0 : i32
    return %c0_i32, %c0_i32_0 : i32, i32
  }
  func.func @transform_2(%arg0: i32) -> (i32, i32) {
    %c0_i32 = arith.constant 0 : i32
    %c0_i32_0 = arith.constant 0 : i32
    %c0_i32_1 = arith.constant 0 : i32
    return %c0_i32, %c0_i32_0 : i32, i32
  }
  func.func @transform_3(%arg0: i32) -> (i32, i32) {
    %c0_i32 = arith.constant 0 : i32
    %c0_i32_0 = arith.constant 0 : i32
    %c0_i32_1 = arith.constant 0 : i32
    return %c0_i32, %c0_i32_0 : i32, i32
  }
  func.func @transform_4(%arg0: i32) -> (i32, i32) {
    %c0_i32 = arith.constant 0 : i32
    %c0_i32_0 = arith.constant 0 : i32
    %c0_i32_1 = arith.constant 0 : i32
    return %c0_i32, %c0_i32_0 : i32, i32
  }
  func.func @transform_5(%arg0: i32) -> (i32, i32) {
    %c0_i32 = arith.constant 0 : i32
    %c0_i32_0 = arith.constant 0 : i32
    return %arg0, %c0_i32 : i32, i32
  }
}

module attributes {stable_mosaic.version = 11 : i64} {
  func.func @mfld_kernel(%arg0: i32, %arg1: memref<8x32xf32, #tpu.memory_space<vmem>>, %arg2: memref<32x2048xf32, #tpu.memory_space<vmem>>, %arg3: memref<1x2048xf32, #tpu.memory_space<vmem>>, %arg4: memref<2048x8xf32, #tpu.memory_space<vmem>>, %arg5: memref<1x8xf32, #tpu.memory_space<vmem>>, %arg6: memref<8x8xf32, #tpu.memory_space<vmem>>) attributes {dimension_semantics = [#tpu.dimension_semantics<parallel>], iteration_bounds = array<i64: 1>, scalar_prefetch = 0 : i64, scratch_operands = 0 : i64, tpu.core_type = #tpu.core_type<tc>, window_params = [{transform_indices = @transform_0, window_bounds = array<i64: 8, 32>}, {pipeline_mode = #tpu.pipeline_mode<synchronous>, transform_indices = @transform_1, window_bounds = array<i64: 32, 2048>}, {pipeline_mode = #tpu.pipeline_mode<synchronous>, transform_indices = @transform_2, window_bounds = array<i64: 1, 2048>}, {pipeline_mode = #tpu.pipeline_mode<synchronous>, transform_indices = @transform_3, window_bounds = array<i64: 2048, 8>}, {pipeline_mode = #tpu.pipeline_mode<synchronous>, transform_indices = @transform_4, window_bounds = array<i64: 1, 8>}, {transform_indices = @transform_5, window_bounds = array<i64: 8, 8>}]} {
    %c0 = arith.constant 0 : index
    %c0_0 = arith.constant 0 : index
    %0 = vector.load %arg1[%c0, %c0_0] : memref<8x32xf32, #tpu.memory_space<vmem>>, vector<8x32xf32>
    %c0_1 = arith.constant 0 : index
    %c0_2 = arith.constant 0 : index
    %1 = vector.load %arg2[%c0_1, %c0_2] : memref<32x2048xf32, #tpu.memory_space<vmem>>, vector<32x2048xf32>
    %cst = arith.constant dense<0.000000e+00> : vector<8x2048xf32>
    %2 = tpu.matmul %0, %1, %cst {dimension_numbers = #tpu.dot_dimension_numbers<[1], [0], [0], [1], [0, 0, 1, 1], [], []>} : vector<8x32xf32>, vector<32x2048xf32>, vector<8x2048xf32> -> vector<8x2048xf32>
    %c0_3 = arith.constant 0 : index
    %c0_4 = arith.constant 0 : index
    %3 = vector.load %arg3[%c0_3, %c0_4] : memref<1x2048xf32, #tpu.memory_space<vmem>>, vector<1x2048xf32>
    %4 = vector.broadcast %3 : vector<1x2048xf32> to vector<8x2048xf32>
    %5 = arith.addf %2, %4 : vector<8x2048xf32>
    %cst_5 = arith.constant 0.000000e+00 : f32
    %6 = vector.broadcast %cst_5 : f32 to vector<8x2048xf32>
    %7 = arith.maximumf %5, %6 : vector<8x2048xf32>
    %c0_6 = arith.constant 0 : index
    %c0_7 = arith.constant 0 : index
    %8 = vector.load %arg4[%c0_6, %c0_7] : memref<2048x8xf32, #tpu.memory_space<vmem>>, vector<2048x8xf32>
    %cst_8 = arith.constant dense<0.000000e+00> : vector<8x8xf32>
    %9 = tpu.matmul %7, %8, %cst_8 {dimension_numbers = #tpu.dot_dimension_numbers<[1], [0], [0], [1], [0, 0, 1, 1], [], []>} : vector<8x2048xf32>, vector<2048x8xf32>, vector<8x8xf32> -> vector<8x8xf32>
    %c0_9 = arith.constant 0 : index
    %c0_10 = arith.constant 0 : index
    %10 = vector.load %arg5[%c0_9, %c0_10] : memref<1x8xf32, #tpu.memory_space<vmem>>, vector<1x8xf32>
    %11 = vector.broadcast %10 : vector<1x8xf32> to vector<8x8xf32>
    %12 = arith.addf %9, %11 : vector<8x8xf32>
    %c0_11 = arith.constant 0 : index
    %c0_12 = arith.constant 0 : index
    %13 = vector.load %arg6[%c0_11, %c0_12] : memref<8x8xf32, #tpu.memory_space<vmem>>, vector<8x8xf32>
    tpu.vector_store %arg6[%c0_11, %c0_12], %12 {strides = array<i32>} : memref<8x8xf32, #tpu.memory_space<vmem>>, vector<8x8xf32>,
    return
  }
  func.func @transform_0(%arg0: i32) -> (i32, i32) {
    %c0_i32 = arith.constant 0 : i32
    %c0_i32_0 = arith.constant 0 : i32
    return %arg0, %c0_i32 : i32, i32
  }
  func.func @transform_1(%arg0: i32) -> (i32, i32) {
    %c0_i32 = arith.constant 0 : i32
    %c0_i32_0 = arith.constant 0 : i32
    %c0_i32_1 = arith.constant 0 : i32
    return %c0_i32, %c0_i32_0 : i32, i32
  }
  func.func @transform_2(%arg0: i32) -> (i32, i32) {
    %c0_i32 = arith.constant 0 : i32
    %c0_i32_0 = arith.constant 0 : i32
    %c0_i32_1 = arith.constant 0 : i32
    return %c0_i32, %c0_i32_0 : i32, i32
  }
  func.func @transform_3(%arg0: i32) -> (i32, i32) {
    %c0_i32 = arith.constant 0 : i32
    %c0_i32_0 = arith.constant 0 : i32
    %c0_i32_1 = arith.constant 0 : i32
    return %c0_i32, %c0_i32_0 : i32, i32
  }
  func.func @transform_4(%arg0: i32) -> (i32, i32) {
    %c0_i32 = arith.constant 0 : i32
    %c0_i32_0 = arith.constant 0 : i32
    %c0_i32_1 = arith.constant 0 : i32
    return %c0_i32, %c0_i32_0 : i32, i32
  }
  func.func @transform_5(%arg0: i32) -> (i32, i32) {
    %c0_i32 = arith.constant 0 : i32
    %c0_i32_0 = arith.constant 0 : i32
    return %arg0, %c0_i32 : i32, i32
  }
}

</mosaic_0001>

<bundles_post_ra>
// kernel: tpu_custom_call.1
= control target key start
LH: loop header
LB: loop body
LE: loop exit
PB: predicated region body
PF: predicated region fallthrough
CT: control target
= control target key end

     0   :  { %v2232_v7 = vmov 0.0   ;;  %vm170_vm0 = vcmask 261120   ;;  %s3358_s0 = inlined_call_operand.vmem [shape: f32[8,32], index: 0, kind: input, shape index: {}]   ;;  %s3359_s1 = inlined_call_operand.vmem [shape: f32[32,2048], index: 1, kind: input, shape index: {}]   ;;  %s3360_s2 = inlined_call_operand.vmem [shape: f32[1,2048], index: 2, kind: input, shape index: {}]   ;;  %s3361_s3 = inlined_call_operand.vmem [shape: f32[2048,8], index: 3, kind: input, shape index: {}]   ;;  %s3362_s4 = inlined_call_operand.vmem [shape: f32[1,8], index: 4, kind: input, shape index: {}]   ;;  %s3363_s5 = inlined_call_operand.hbm [shape: f32[8,8], index: 5, kind: output, shape index: {}]  }
   0x1   :  { %v23_v0 = vld [vmem:[%s3359_s1 + $0x8] sm:$0xff]  ;;  %v25_v2 = vld [vmem:[%s3359_s1 + $0x18] sm:$0xff]  ;;  %v22_v5 = vld [vmem:[%s3359_s1] sm:$0xff]  ;;  %238 = vmatprep.mubr.f32.mxu0 %v2232_v7  ;;  %309 = vmatprep.mubr.f32.mxu1 %v2232_v7 }
   0x2   :  { %v39_v1 = vld [vmem:[%s3359_s1 + $0x88] sm:$0xff]  ;;  %v41_v4 = vld [vmem:[%s3359_s1 + $0x98] sm:$0xff]  ;;  %v38_v6 = vld [vmem:[%s3359_s1 + $0x80] sm:$0xff] }
   0x3   :  { %v1886_v3 = vpack.c.bf16 %v39_v1, %v23_v0  ;;  %v1894_v8 = vpack.c.bf16 %v41_v4, %v25_v2  ;;  %v1888_v9 = vpack.c.bf16 %v38_v6, %v22_v5  ;;  %v24_v10 = vld [vmem:[%s3359_s1 + $0x10] sm:$0xff]  ;;  %v55_v12 = vld [vmem:[%s3359_s1 + $0x108] sm:$0xff]  ;;  %v57_v15 = vld [vmem:[%s3359_s1 + $0x118] sm:$0xff] }
   0x4   :  { %v40_v11 = vld [vmem:[%s3359_s1 + $0x90] sm:$0xff]  ;;  %v71_v14 = vld [vmem:[%s3359_s1 + $0x188] sm:$0xff]  ;;  %v73_v16 = vld [vmem:[%s3359_s1 + $0x198] sm:$0xff] }
   0x5   :  { %1887 = vmatprep.subr.bf16.mxu0 %v1886_v3  ;;  %v1896_v13 = vpack.c.bf16 %v40_v11, %v24_v10  ;;  %1895 = vmatprep.subr.bf16.mxu1 %v1894_v8  ;;  %v1890_v17 = vpack.c.bf16 %v71_v14, %v55_v12  ;;  %v1898_v18 = vpack.c.bf16 %v73_v16, %v57_v15  ;;  %v54_v19 = vld [vmem:[%s3359_s1 + $0x100] sm:$0xff]  ;;  %v56_v21 = vld [vmem:[%s3359_s1 + $0x110] sm:$0xff]  ;;  %v27_v24 = vld [vmem:[%s3359_s1 + $0x28] sm:$0xff] }
   0x6   :  { %1889 = vmatpush1.bf16.msra.mxu0 %v1888_v9  ;;  %v70_v20 = vld [vmem:[%s3359_s1 + $0x180] sm:$0xff]  ;;  %v72_v23 = vld [vmem:[%s3359_s1 + $0x190] sm:$0xff]  ;;  %v43_v27 = vld [vmem:[%s3359_s1 + $0xa8] sm:$0xff] }
   0x7   :  { %1897 = vmatpush1.bf16.msra.mxu1 %v1896_v13  ;;  %v1892_v22 = vpack.c.bf16 %v70_v20, %v54_v19  ;;  %1891 = vmatprep.subr.bf16.mxu0 %v1890_v17  ;;  %v1900_v25 = vpack.c.bf16 %v72_v23, %v56_v21  ;;  %v2320_v26 = vld [vmem:[%s3358_s0] sm:$0xff]  ;;  %v29_v28 = vld [vmem:[%s3359_s1 + $0x38] sm:$0xff]  ;;  %v1902_v30 = vpack.c.bf16 %v43_v27, %v27_v24  ;;  %v28_v34 = vld [vmem:[%s3359_s1 + $0x30] sm:$0xff] }
   0x8   :  { %1899 = vmatprep.subr.bf16.mxu1 %v1898_v18  ;;  %v45_v29 = vld [vmem:[%s3359_s1 + $0xb8] sm:$0xff]  ;;  %v26_v32 = vld [vmem:[%s3359_s1 + $0x20] sm:$0xff]  ;;  %v44_v36 = vld [vmem:[%s3359_s1 + $0xb0] sm:$0xff] }
   0x9   :  { %v1910_v31 = vpack.c.bf16 %v45_v29, %v29_v28  ;;  %v42_v33 = vld [vmem:[%s3359_s1 + $0xa0] sm:$0xff]  ;;  %v59_v37 = vld [vmem:[%s3359_s1 + $0x128] sm:$0xff]  ;;  %v1912_v39 = vpack.c.bf16 %v44_v36, %v28_v34  ;;  %v61_v41 = vld [vmem:[%s3359_s1 + $0x138] sm:$0xff] }
   0xa   :  { %1893 = vmatpush1.bf16.msra.mxu0 %v1892_v22  ;;  %v1904_v35 = vpack.c.bf16 %v42_v33, %v26_v32  ;;  %v75_v38 = vld [vmem:[%s3359_s1 + $0x1a8] sm:$0xff]  ;;  %v77_v42 = vld [vmem:[%s3359_s1 + $0x1b8] sm:$0xff]  ;;  %v58_v43 = vld [vmem:[%s3359_s1 + $0x120] sm:$0xff] }
   0xb   :  { %1901 = vmatpush1.bf16.msra.mxu1 %v1900_v25  ;;  %1903 = vmatprep.subr.bf16.mxu0 %v1902_v30  ;;  %v1906_v40 = vpack.c.bf16 %v75_v38, %v59_v37  ;;  %v1914_v44 = vpack.c.bf16 %v77_v42, %v61_v41  ;;  %v74_v45 = vld [vmem:[%s3359_s1 + $0x1a0] sm:$0xff]  ;;  %v60_v46 = vld [vmem:[%s3359_s1 + $0x130] sm:$0xff]  ;;  %v31_v48 = vld [vmem:[%s3359_s1 + $0x48] sm:$0xff] }
   0xc   :  { %1911 = vmatprep.subr.bf16.mxu1 %v1910_v31  ;;  %v76_v47 = vld [vmem:[%s3359_s1 + $0x1b0] sm:$0xff]  ;;  %v47_v49 = vld [vmem:[%s3359_s1 + $0xc8] sm:$0xff]  ;;  %v33_v50 = vld [vmem:[%s3359_s1 + $0x58] sm:$0xff]  ;;  %v1908_v51 = vpack.c.bf16 %v74_v45, %v58_v43 }
   0xd   :  { %1597 = vmatmul.mubr.msk.f32.vlgmr.msra.gmra.mrb[0].mxu0 %vm170_vm0, %v2320_v26  ;;  %v49_v52 = vld [vmem:[%s3359_s1 + $0xd8] sm:$0xff]  ;;  %v1916_v53 = vpack.c.bf16 %v76_v47, %v60_v46  ;;  %v1918_v54 = vpack.c.bf16 %v47_v49, %v31_v48  ;;  %v30_v55 = vld [vmem:[%s3359_s1 + $0x40] sm:$0xff]  ;;  %v32_v57 = vld [vmem:[%s3359_s1 + $0x50] sm:$0xff] }
   0xe   :  { %1598 = vmatmul.mubr.msk.f32.vlgmr.msra.gmra.mrb[0].mxu1 %vm170_vm0, %v2320_v26  ;;  %1905 = vmatpush1.bf16.msra.mxu0 %v1904_v35  ;;  %v46_v56 = vld [vmem:[%s3359_s1 + $0xc0] sm:$0xff]  ;;  %v1926_v58 = vpack.c.bf16 %v49_v52, %v33_v50  ;;  %v48_v59 = vld [vmem:[%s3359_s1 + $0xd0] sm:$0xff]  ;;  %v63_v60 = vld [vmem:[%s3359_s1 + $0x148] sm:$0xff] }
   0xf   :  { %1913 = vmatpush1.bf16.msra.mxu1 %v1912_v39  ;;  %1907 = vmatprep.subr.bf16.mxu0 %v1906_v40  ;;  %v79_v61 = vld [vmem:[%s3359_s1 + $0x1c8] sm:$0xff]  ;;  %v65_v62 = vld [vmem:[%s3359_s1 + $0x158] sm:$0xff]  ;;  %v1920_v0 = vpack.c.bf16 %v46_v56, %v30_v55  ;;  %v1928_v1 = vpack.c.bf16 %v48_v59, %v32_v57  ;;  %v62_v3 = vld [vmem:[%s3359_s1 + $0x140] sm:$0xff] }
  0x10   :  { %1915 = vmatprep.subr.bf16.mxu1 %v1914_v44  ;;  %380 = vmatprep.mubr.f32.mxu0 %v2232_v7  ;;  %v81_v63 = vld [vmem:[%s3359_s1 + $0x1d8] sm:$0xff]  ;;  %v1922_v2 = vpack.c.bf16 %v79_v61, %v63_v60  ;;  %v78_v4 = vld [vmem:[%s3359_s1 + $0x1c0] sm:$0xff]  ;;  %v64_v5 = vld [vmem:[%s3359_s1 + $0x150] sm:$0xff] }
  0x11   :  { %451 = vmatprep.mubr.f32.mxu1 %v2232_v7  ;;  %v1930_v6 = vpack.c.bf16 %v81_v63, %v65_v62  ;;  %v80_v8 = vld [vmem:[%s3359_s1 + $0x1d0] sm:$0xff]  ;;  %v35_v9 = vld [vmem:[%s3359_s1 + $0x68] sm:$0xff]  ;;  %v37_v11 = vld [vmem:[%s3359_s1 + $0x78] sm:$0xff]  ;;  %v1924_v13 = vpack.c.bf16 %v78_v4, %v62_v3 }
  0x12   :  { %1909 = vmatpush1.bf16.msra.mxu0 %v1908_v51  ;;  %v51_v10 = vld [vmem:[%s3359_s1 + $0xe8] sm:$0xff]  ;;  %v53_v12 = vld [vmem:[%s3359_s1 + $0xf8] sm:$0xff]  ;;  %v1932_v14 = vpack.c.bf16 %v80_v8, %v64_v5  ;;  %v34_v16 = vld [vmem:[%s3359_s1 + $0x60] sm:$0xff] }
  0x13   :  { %1917 = vmatpush1.bf16.msra.mxu1 %v1916_v53  ;;  %1919 = vmatprep.subr.bf16.mxu0 %v1918_v54  ;;  %v1934_v15 = vpack.c.bf16 %v51_v10, %v35_v9  ;;  %v50_v17 = vld [vmem:[%s3359_s1 + $0xe0] sm:$0xff]  ;;  %v36_v18 = vld [vmem:[%s3359_s1 + $0x70] sm:$0xff]  ;;  %v1942_v19 = vpack.c.bf16 %v53_v12, %v37_v11  ;;  %v67_v21 = vld [vmem:[%s3359_s1 + $0x168] sm:$0xff] }
  0x14   :  { %1927 = vmatprep.subr.bf16.mxu1 %v1926_v58  ;;  %v52_v20 = vld [vmem:[%s3359_s1 + $0xf0] sm:$0xff]  ;;  %v83_v22 = vld [vmem:[%s3359_s1 + $0x1e8] sm:$0xff]  ;;  %v69_v23 = vld [vmem:[%s3359_s1 + $0x178] sm:$0xff]  ;;  %v1936_v25 = vpack.c.bf16 %v50_v17, %v34_v16 }
  0x15   :  { %1599 = vmatmul.mubr.msk.f32.vlgmr.msra.gmra.mrb[2].mxu0 %vm170_vm0, %v2320_v26  ;;  %v85_v24 = vld [vmem:[%s3359_s1 + $0x1f8] sm:$0xff]  ;;  %v1944_v27 = vpack.c.bf16 %v52_v20, %v36_v18  ;;  %v1938_v28 = vpack.c.bf16 %v83_v22, %v67_v21  ;;  %v66_v29 = vld [vmem:[%s3359_s1 + $0x160] sm:$0xff]  ;;  %v68_v31 = vld [vmem:[%s3359_s1 + $0x170] sm:$0xff] }
  0x16   :  { %1600 = vmatmul.mubr.msk.f32.vlgmr.msra.gmra.mrb[2].mxu1 %vm170_vm0, %v2320_v26  ;;  %1921 = vmatpush1.bf16.msra.mxu0 %v1920_v0  ;;  %v82_v30 = vld [vmem:[%s3359_s1 + $0x1e0] sm:$0xff]  ;;  %v1946_v32 = vpack.c.bf16 %v85_v24, %v69_v23  ;;  %v84_v33 = vld [vmem:[%s3359_s1 + $0x1f0] sm:$0xff]  ;;  %v775_v35 = vld [vmem:[%s3361_s3 + $0x88] sm:$0xff] }
  0x17   :  { %1929 = vmatpush1.bf16.msra.mxu1 %v1928_v1  ;;  %1923 = vmatprep.subr.bf16.mxu0 %v1922_v2  ;;  %v774_v34 = vld [vmem:[%s3361_s3 + $0x80] sm:$0xff]  ;;  %v807_v37 = vld [vmem:[%s3361_s3 + $0x188] sm:$0xff]  ;;  %v1940_v38 = vpack.c.bf16 %v82_v30, %v66_v29  ;;  %v1948_v39 = vpack.c.bf16 %v84_v33, %v68_v31  ;;  %v776_v46 = vld [vmem:[%s3361_s3 + $0x90] sm:$0xff] }
  0x18   :  { %1931 = vmatprep.subr.bf16.mxu1 %v1930_v6  ;;  %522 = vmatprep.mubr.f32.mxu0 %v2232_v7  ;;  %v806_v36 = vld [vmem:[%s3361_s3 + $0x180] sm:$0xff]  ;;  %v1950_v40 = vpack.c.bf16 %v775_v35, %v774_v34  ;;  %v759_v42 = vld [vmem:[%s3361_s3 + $0x8] sm:$0xff]  ;;  %v777_v47 = vld [vmem:[%s3361_s3 + $0x98] sm:$0xff] }
  0x19   :  { %593 = vmatprep.mubr.f32.mxu1 %v2232_v7  ;;  %v758_v41 = vld [vmem:[%s3361_s3] sm:$0xff]  ;;  %v1982_v44 = vpack.c.bf16 %v807_v37, %v806_v36  ;;  %v791_v45 = vld [vmem:[%s3361_s3 + $0x108] sm:$0xff]  ;;  %v808_v48 = vld [vmem:[%s3361_s3 + $0x190] sm:$0xff]  ;;  %v1954_v52 = vpack.c.bf16 %v777_v47, %v776_v46 }
  0x1a   :  { %1925 = vmatpush1.bf16.msra.mxu0 %v1924_v13  ;;  %v790_v43 = vld [vmem:[%s3361_s3 + $0x100] sm:$0xff]  ;;  %v809_v49 = vld [vmem:[%s3361_s3 + $0x198] sm:$0xff]  ;;  %v1952_v50 = vpack.c.bf16 %v759_v42, %v758_v41  ;;  %v760_v53 = vld [vmem:[%s3361_s3 + $0x10] sm:$0xff] }
  0x1b   :  { %1933 = vmatpush1.bf16.msra.mxu1 %v1932_v14  ;;  %1935 = vmatprep.subr.bf16.mxu0 %v1934_v15  ;;  %v1984_v51 = vpack.c.bf16 %v791_v45, %v790_v43  ;;  %v792_v54 = vld [vmem:[%s3361_s3 + $0x110] sm:$0xff]  ;;  %v1986_v55 = vpack.c.bf16 %v809_v49, %v808_v48  ;;  %v793_v56 = vld [vmem:[%s3361_s3 + $0x118] sm:$0xff]  ;;  %v778_v57 = vld [vmem:[%s3361_s3 + $0xa0] sm:$0xff] }
  0x1c   :  { %1943 = vmatprep.subr.bf16.mxu1 %v1942_v19  ;;  %v779_v58 = vld [vmem:[%s3361_s3 + $0xa8] sm:$0xff]  ;;  %v810_v59 = vld [vmem:[%s3361_s3 + $0x1a0] sm:$0xff]  ;;  %v1988_v62 = vpack.c.bf16 %v793_v56, %v792_v54  ;;  %v780_v4 = vld [vmem:[%s3361_s3 + $0xb0] sm:$0xff] }
  0x1d   :  { %1601 = vmatmul.mubr.msk.f32.vlgmr.msra.gmra.mrb[4].mxu0 %vm170_vm0, %v2320_v26  ;;  %v811_v60 = vld [vmem:[%s3361_s3 + $0x1a8] sm:$0xff]  ;;  %v1958_v63 = vpack.c.bf16 %v779_v58, %v778_v57  ;;  %v762_v0 = vld [vmem:[%s3361_s3 + $0x20] sm:$0xff]  ;;  %v781_v5 = vld [vmem:[%s3361_s3 + $0xb8] sm:$0xff] }
  0x1e   :  { %1602 = vmatmul.mubr.msk.f32.vlgmr.msra.gmra.mrb[4].mxu1 %vm170_vm0, %v2320_v26  ;;  %1937 = vmatpush1.bf16.msra.mxu0 %v1936_v25  ;;  %v763_v1 = vld [vmem:[%s3361_s3 + $0x28] sm:$0xff]  ;;  %v794_v2 = vld [vmem:[%s3361_s3 + $0x120] sm:$0xff]  ;;  %v812_v6 = vld [vmem:[%s3361_s3 + $0x1b0] sm:$0xff] }
  0x1f   :  { %1945 = vmatpush1.bf16.msra.mxu1 %v1944_v27  ;;  %1939 = vmatprep.subr.bf16.mxu0 %v1938_v28  ;;  %v795_v3 = vld [vmem:[%s3361_s3 + $0x128] sm:$0xff]  ;;  %v813_v8 = vld [vmem:[%s3361_s3 + $0x1b8] sm:$0xff]  ;;  %v1960_v9 = vpack.c.bf16 %v763_v1, %v762_v0 }
  0x20   :  { %1947 = vmatprep.subr.bf16.mxu1 %v1946_v32  ;;  %664 = vmatprep.mubr.f32.mxu0 %v2232_v7 }
  0x21   :  { %735 = vmatprep.mubr.f32.mxu1 %v2232_v7  ;;  %v761_v7 = vld [vmem:[%s3361_s3 + $0x18] sm:$0xff] }
  0x22   :  { %1941 = vmatpush1.bf16.msra.mxu0 %v1940_v38  ;;  %v1956_v61 = vpack.c.bf16 %v761_v7, %v760_v53 }
  0x23   :  { %1949 = vmatpush1.bf16.msra.mxu1 %v1948_v39  ;;  %1951 = vmatprep.subr.bf16.mxu0 %v1950_v40 }
  0x24   :  { %1983 = vmatprep.subr.bf16.mxu1 %v1982_v44 }
  0x25   :  { %1603 = vmatmul.mubr.msk.f32.vlgmr.msra.gmra.mrb[6].mxu0 %vm170_vm0, %v2320_v26 }
  0x26   :  { %1604 = vmatmul.mubr.msk.f32.vlgmr.msra.gmra.mrb[6].mxu1 %vm170_vm0, %v2320_v26  ;;  %1953 = vmatpush3.bf16.msra.mxu0 %v1952_v50  ;;  %v1990_v26 = vpack.c.bf16 %v811_v60, %v810_v59 }
  0x27   :  { %1985 = vmatpush3.bf16.msra.mxu1 %v1984_v51  ;;  %1955 = vmatprep.subr.bf16.mxu0 %v1954_v52 }
  0x28   :  { %1987 = vmatprep.subr.bf16.mxu1 %v1986_v55 }
  0x2a   :  { %1957 = vmatpush3.bf16.msra.mxu0 %v1956_v61 }
  0x2b   :  { %10 = vsyncpa [#allocation3], 0  ;;  %1989 = vmatpush3.bf16.msra.mxu1 %v1988_v62  ;;  %1959 = vmatprep.subr.bf16.mxu0 %v1958_v63  ;;  %v1992_v10 = vpack.c.bf16 %v795_v3, %v794_v2  ;;  %v1962_v11 = vpack.c.bf16 %v781_v5, %v780_v4  ;;  %v764_v12 = vld [vmem:[%s3361_s3 + $0x30] sm:$0xff]  ;;  %v765_v13 = vld [vmem:[%s3361_s3 + $0x38] sm:$0xff]  ;;  %v1994_v15 = vpack.c.bf16 %v813_v8, %v812_v6  ;;  %vm1581_vm1 = vcmask 64512  }
  0x2c   :  { %v796_v14 = vld [vmem:[%s3361_s3 + $0x130] sm:$0xff]  ;;  %1991 = vmatprep.subr.bf16.mxu1 %v1990_v26  ;;  %v797_v16 = vld [vmem:[%s3361_s3 + $0x138] sm:$0xff]  ;;  %v782_v17 = vld [vmem:[%s3361_s3 + $0xc0] sm:$0xff]  ;;  %v1964_v21 = vpack.c.bf16 %v765_v13, %v764_v12 }
  0x2d   :  { %v783_v18 = vld [vmem:[%s3361_s3 + $0xc8] sm:$0xff]  ;;  %v814_v19 = vld [vmem:[%s3361_s3 + $0x1c0] sm:$0xff]  ;;  %v1996_v22 = vpack.c.bf16 %v797_v16, %v796_v14  ;;  %v784_v30 = vld [vmem:[%s3361_s3 + $0xd0] sm:$0xff] }
  0x2e   :  { %v815_v20 = vld [vmem:[%s3361_s3 + $0x1c8] sm:$0xff]  ;;  %1961 = vmatpush3.bf16.msra.mxu0 %v1960_v9  ;;  %v1966_v23 = vpack.c.bf16 %v783_v18, %v782_v17  ;;  %v766_v24 = vld [vmem:[%s3361_s3 + $0x40] sm:$0xff]  ;;  %v785_v31 = vld [vmem:[%s3361_s3 + $0xd8] sm:$0xff]  ;;  %v90_v9 = vlaneseq }
  0x2f   :  { %1993 = vmatpush3.bf16.msra.mxu1 %v1992_v10  ;;  %1963 = vmatprep.subr.bf16.mxu0 %v1962_v11  ;;  %v767_v25 = vld [vmem:[%s3361_s3 + $0x48] sm:$0xff]  ;;  %v798_v27 = vld [vmem:[%s3361_s3 + $0x140] sm:$0xff]  ;;  %v1998_v28 = vpack.c.bf16 %v815_v20, %v814_v19  ;;  %v816_v32 = vld [vmem:[%s3361_s3 + $0x1d0] sm:$0xff]  ;;  %v1970_v36 = vpack.c.bf16 %v785_v31, %v784_v30 }
  0x30   :  { %1995 = vmatprep.subr.bf16.mxu1 %v1994_v15  ;;  %v799_v29 = vld [vmem:[%s3361_s3 + $0x148] sm:$0xff]  ;;  %v817_v33 = vld [vmem:[%s3361_s3 + $0x1d8] sm:$0xff]  ;;  %v1968_v34 = vpack.c.bf16 %v767_v25, %v766_v24  ;;  %v768_v37 = vld [vmem:[%s3361_s3 + $0x50] sm:$0xff]  ;;  %v2689_v10 = vshrl.u32 %v90_v9, 7 }
  0x31   :  { %v2000_v35 = vpack.c.bf16 %v799_v29, %v798_v27  ;;  %v769_v38 = vld [vmem:[%s3361_s3 + $0x58] sm:$0xff]  ;;  %v800_v39 = vld [vmem:[%s3361_s3 + $0x150] sm:$0xff]  ;;  %v2002_v40 = vpack.c.bf16 %v817_v33, %v816_v32  ;;  %v786_v42 = vld [vmem:[%s3361_s3 + $0xe0] sm:$0xff] }
  0x32   :  { %1965 = vmatpush3.bf16.msra.mxu0 %v1964_v21  ;;  %v801_v41 = vld [vmem:[%s3361_s3 + $0x158] sm:$0xff]  ;;  %v787_v43 = vld [vmem:[%s3361_s3 + $0xe8] sm:$0xff]  ;;  %v818_v44 = vld [vmem:[%s3361_s3 + $0x1e0] sm:$0xff]  ;;  %v1972_v46 = vpack.c.bf16 %v769_v38, %v768_v37  ;;  %v92_v11 = vsub.s32 0, %v2689_v10  ;;  %v100_v13 = vsub.s32 2, %v2689_v10  ;;  %v96_v14 = vsub.s32 1, %v2689_v10 }
  0x33   :  { %1997 = vmatpush3.bf16.msra.mxu1 %v1996_v22  ;;  %1967 = vmatprep.subr.bf16.mxu0 %v1966_v23  ;;  %v819_v45 = vld [vmem:[%s3361_s3 + $0x1e8] sm:$0xff]  ;;  %v2004_v47 = vpack.c.bf16 %v801_v41, %v800_v39  ;;  %v1974_v48 = vpack.c.bf16 %v787_v43, %v786_v42  ;;  %v770_v49 = vld [vmem:[%s3361_s3 + $0x60] sm:$0xff]  ;;  %v788_v55 = vld [vmem:[%s3361_s3 + $0xf0] sm:$0xff]  ;;  %v104_v15 = vsub.s32 3, %v2689_v10  ;;  %v120_v38 = vsub.s32 7, %v2689_v10 }
  0x34   :  { %1999 = vmatprep.subr.bf16.mxu1 %v1998_v28  ;;  %v771_v50 = vld [vmem:[%s3361_s3 + $0x68] sm:$0xff]  ;;  %v2006_v51 = vpack.c.bf16 %v819_v45, %v818_v44  ;;  %v802_v52 = vld [vmem:[%s3361_s3 + $0x160] sm:$0xff]  ;;  %v789_v56 = vld [vmem:[%s3361_s3 + $0xf8] sm:$0xff] }
  0x35   :  { %v803_v53 = vld [vmem:[%s3361_s3 + $0x168] sm:$0xff]  ;;  %v1976_v7 = vpack.c.bf16 %v771_v50, %v770_v49  ;;  %v820_v57 = vld [vmem:[%s3361_s3 + $0x1f0] sm:$0xff]  ;;  %v1978_v58 = vpack.c.bf16 %v789_v56, %v788_v55  ;;  %v821_v59 = vld [vmem:[%s3361_s3 + $0x1f8] sm:$0xff] }
  0x36   :  { %1969 = vmatpush3.bf16.msra.mxu0 %v1968_v34  ;;  %v2008_v54 = vpack.c.bf16 %v803_v53, %v802_v52  ;;  %v772_v60 = vld [vmem:[%s3361_s3 + $0x70] sm:$0xff]  ;;  %v773_v61 = vld [vmem:[%s3361_s3 + $0x78] sm:$0xff]  ;;  %v2010_v62 = vpack.c.bf16 %v821_v59, %v820_v57  ;;  %v838_v26 = vld [vmem:[%s3361_s3 + $0x280] sm:$0xff]  ;;  %v112_v34 = vsub.s32 5, %v2689_v10 }
  0x37   :  { %2001 = vmatpush3.bf16.msra.mxu1 %v2000_v35  ;;  %1971 = vmatprep.subr.bf16.mxu0 %v1970_v36  ;;  %v1980_v63 = vpack.c.bf16 %v773_v61, %v772_v60  ;;  %v804_v0 = vld [vmem:[%s3361_s3 + $0x170] sm:$0xff]  ;;  %v805_v1 = vld [vmem:[%s3361_s3 + $0x178] sm:$0xff]  ;;  %v839_v3 = vld [vmem:[%s3361_s3 + $0x288] sm:$0xff] }
  0x38   :  { %2003 = vmatprep.subr.bf16.mxu1 %v2002_v40  ;;  %v2012_v2 = vpack.c.bf16 %v805_v1, %v804_v0  ;;  %v870_v4 = vld [vmem:[%s3361_s3 + $0x380] sm:$0xff]  ;;  %v2014_v5 = vpack.c.bf16 %v839_v3, %v838_v26  ;;  %v871_v6 = vld [vmem:[%s3361_s3 + $0x388] sm:$0xff]  ;;  %v840_v32 = vld [vmem:[%s3361_s3 + $0x290] sm:$0xff] }
  0x39   :  { %v2046_v8 = vpack.c.bf16 %v871_v6, %v870_v4  ;;  %v2695_v12 = vld [vmem:[%s3360_s2] sm:$0xff]  ;;  %v823_v25 = vld [vmem:[%s3361_s3 + $0x208] sm:$0xff]  ;;  %v841_v33 = vld [vmem:[%s3361_s3 + $0x298] sm:$0xff] }
  0x3a   :  { %1973 = vmatpush3.bf16.msra.mxu0 %v1972_v46  ;;  %v93_v16 = vrot.slane %v2695_v12, %v92_v11  ;;  %v101_v17 = vrot.slane %v2695_v12, %v100_v13  ;;  %v97_v18 = vrot.slane %v2695_v12, %v96_v14  ;;  %v105_v19 = vrot.slane %v2695_v12, %v104_v15  ;;  %v822_v24 = vld [vmem:[%s3361_s3 + $0x200] sm:$0xff]  ;;  %v855_v31 = vld [vmem:[%s3361_s3 + $0x308] sm:$0xff]  ;;  %v872_v36 = vld [vmem:[%s3361_s3 + $0x390] sm:$0xff] }
  0x3b   :  { %2005 = vmatpush3.bf16.msra.mxu1 %v2004_v47  ;;  %1975 = vmatprep.subr.bf16.mxu0 %v1974_v48  ;;  %v854_v27 = vld [vmem:[%s3361_s3 + $0x300] sm:$0xff]  ;;  %v873_v37 = vld [vmem:[%s3361_s3 + $0x398] sm:$0xff]  ;;  %v2016_v41 = vpack.c.bf16 %v823_v25, %v822_v24  ;;  %v2018_v45 = vpack.c.bf16 %v841_v33, %v840_v32  ;;  %v824_v46 = vld [vmem:[%s3361_s3 + $0x210] sm:$0xff]  ;;  %v113_v53 = vrot.slane %v2695_v12, %v112_v34 }
  0x3c   :  { %2007 = vmatprep.subr.bf16.mxu1 %v2006_v51  ;;  %v2048_v44 = vpack.c.bf16 %v855_v31, %v854_v27  ;;  %v825_v47 = vld [vmem:[%s3361_s3 + $0x218] sm:$0xff]  ;;  %v856_v48 = vld [vmem:[%s3361_s3 + $0x310] sm:$0xff]  ;;  %v2050_v49 = vpack.c.bf16 %v873_v37, %v872_v36  ;;  %v842_v51 = vld [vmem:[%s3361_s3 + $0x2a0] sm:$0xff]  ;;  %v121_v55 = vrot.slane %v2695_v12, %v120_v38 }
  0x3d   :  { %v857_v50 = vld [vmem:[%s3361_s3 + $0x318] sm:$0xff]  ;;  %v843_v52 = vld [vmem:[%s3361_s3 + $0x2a8] sm:$0xff]  ;;  %v2020_v56 = vpack.c.bf16 %v825_v47, %v824_v46  ;;  %v826_v57 = vld [vmem:[%s3361_s3 + $0x220] sm:$0xff] }
  0x3e   :  { %1977 = vmatpush3.bf16.msra.mxu0 %v1976_v7  ;;  %v874_v7 = vld [vmem:[%s3361_s3 + $0x3a0] sm:$0xff]  ;;  %v2052_v59 = vpack.c.bf16 %v857_v50, %v856_v48  ;;  %v2022_v60 = vpack.c.bf16 %v843_v52, %v842_v51  ;;  %v827_v61 = vld [vmem:[%s3361_s3 + $0x228] sm:$0xff]  ;;  %v844_v26 = vld [vmem:[%s3361_s3 + $0x2b0] sm:$0xff]  ;;  %v108_v52 = vsub.s32 4, %v2689_v10 }
  0x3f   :  { %2009 = vmatpush3.bf16.msra.mxu1 %v2008_v54  ;;  %1979 = vmatprep.subr.bf16.mxu0 %v1978_v58  ;;  %v875_v54 = vld [vmem:[%s3361_s3 + $0x3a8] sm:$0xff]  ;;  %v845_v3 = vld [vmem:[%s3361_s3 + $0x2b8] sm:$0xff]  ;;  %v848_v46 = vld [vmem:[%s3361_s3 + $0x2d0] sm:$0xff] }
  0x40   :  { %2011 = vmatprep.subr.bf16.mxu1 %v2010_v62  ;;  %v858_v62 = vld [vmem:[%s3361_s3 + $0x320] sm:$0xff]  ;;  %v2793_v6 = vld [vmem:[%s3360_s2 + $0x8] sm:$0xff]  ;;  %v877_v9 = vld [vmem:[%s3361_s3 + $0x3b8] sm:$0xff] }
  0x41   :  { %v125_v25 = vrot.slane %v2793_v6, %v92_v11  ;;  %v133_v31 = vrot.slane %v2793_v6, %v100_v13  ;;  %v878_v11 = vld [vmem:[%s3361_s3 + $0x3c0] sm:$0xff]  ;;  %v879_v32 = vld [vmem:[%s3361_s3 + $0x3c8] sm:$0xff]  ;;  %v849_v47 = vld [vmem:[%s3361_s3 + $0x2d8] sm:$0xff] }
  0x42   :  { %1981 = vmatpush3.bf16.msra.mxu0 %v1980_v63  ;;  %v859_v63 = vld [vmem:[%s3361_s3 + $0x328] sm:$0xff]  ;;  %v830_v13 = vld [vmem:[%s3361_s3 + $0x240] sm:$0xff]  ;;  %v880_v50 = vld [vmem:[%s3361_s3 + $0x3d0] sm:$0xff] }
  0x43   :  { %2013 = vmatpush3.bf16.msra.mxu1 %v2012_v2  ;;  %2015 = vmatprep.subr.bf16.mxu0 %v2014_v5  ;;  %v2054_v2 = vpack.c.bf16 %v875_v54, %v874_v7  ;;  %v881_v51 = vld [vmem:[%s3361_s3 + $0x3d8] sm:$0xff]  ;;  %v116_v7 = vsub.s32 6, %v2689_v10  ;;  %v982_v10 = vld [vmem:[%s3361_s3 + $0x700] sm:$0xff] }
  0x44   :  { %2047 = vmatprep.subr.bf16.mxu1 %v2046_v8  ;;  %v876_v8 = vld [vmem:[%s3361_s3 + $0x3b0] sm:$0xff] }
  0x45   :  { %v2058_v27 = vpack.c.bf16 %v877_v9, %v876_v8 }
  0xe0   :  { %v240_v20 = vpop.f32.mrb[0].mxu0 }
  0xe1   :  { %v241_v21 = vadd.f32 %v240_v20, %v93_v16  ;;  %v311_v22 = vpop.f32.mrb[0].mxu1  ;;  %v242_v23 = vpop.f32.mrb[1].mxu0  ;;  %v2026_v20 = vpack.c.bf16 %v845_v3, %v844_v26  ;;  %v882_v26 = vld [vmem:[%s3361_s3 + $0x3e0] sm:$0xff]  ;;  %v883_v3 = vld [vmem:[%s3361_s3 + $0x3e8] sm:$0xff] }
  0xe2   :  { %v312_v28 = vadd.f32 %v311_v22, %v101_v17  ;;  %v243_v29 = vadd.f32 %v242_v23, %v97_v18  ;;  %v313_v30 = vpop.f32.mrb[1].mxu1  ;;  %v2024_v17 = vpack.c.bf16 %v827_v61, %v826_v57  ;;  %v829_v22 = vld [vmem:[%s3361_s3 + $0x238] sm:$0xff]  ;;  %v860_v23 = vld [vmem:[%s3361_s3 + $0x330] sm:$0xff]  ;;  %v2066_v61 = vpack.c.bf16 %v881_v51, %v880_v50 }
  0xe3   :  { %v314_v35 = vadd.f32 %v313_v30, %v105_v19  ;;  %v742_v42 = vmax.f32 %v241_v21, 0.0  ;;  %v2056_v19 = vpack.c.bf16 %v859_v63, %v858_v62  ;;  %v828_v21 = vld [vmem:[%s3361_s3 + $0x230] sm:$0xff]  ;;  %v847_v30 = vld [vmem:[%s3361_s3 + $0x2c8] sm:$0xff]  ;;  %v833_v57 = vld [vmem:[%s3361_s3 + $0x258] sm:$0xff]  ;;  %v137_v50 = vrot.slane %v2793_v6, %v104_v15 }
  0xe4   :  { %v744_v39 = vmax.f32 %v312_v28, 0.0  ;;  %v743_v40 = vmax.f32 %v243_v29, 0.0  ;;  %v861_v28 = vld [vmem:[%s3361_s3 + $0x338] sm:$0xff]  ;;  %v846_v29 = vld [vmem:[%s3361_s3 + $0x2c0] sm:$0xff]  ;;  %v2028_v33 = vpack.c.bf16 %v829_v22, %v828_v21  ;;  %v2070_v22 = vpack.c.bf16 %v883_v3, %v882_v26 }
  0xe5   :  { %v745_v43 = vmax.f32 %v314_v35, 0.0  ;;  %v2060_v36 = vpack.c.bf16 %v861_v28, %v860_v23  ;;  %v2030_v37 = vpack.c.bf16 %v847_v30, %v846_v29  ;;  %v865_v62 = vld [vmem:[%s3361_s3 + $0x358] sm:$0xff]  ;;  %v850_v63 = vld [vmem:[%s3361_s3 + $0x2e0] sm:$0xff]  ;;  %v867_v23 = vld [vmem:[%s3361_s3 + $0x368] sm:$0xff]  ;;  %v109_v29 = vrot.slane %v2695_v12, %v108_v52 }
  0xe6   :  { %1085 = vmatprep.mubr.f32.mxu0 %v743_v40  ;;  %v862_v40 = vld [vmem:[%s3361_s3 + $0x340] sm:$0xff]  ;;  %v884_v30 = vld [vmem:[%s3361_s3 + $0x3f0] sm:$0xff]  ;;  %v889_v3 = vld [vmem:[%s3361_s3 + $0x418] sm:$0xff] }
  0xe7   :  { %1155 = vmatprep.mubr.f32.mxu1 %v745_v43  ;;  %1086 = vmatmul.mubr.f32.vlgmr.msra.gmra.mrb[8].mxu0 %v742_v42  ;;  %v918_v15 = vld [vmem:[%s3361_s3 + $0x500] sm:$0xff] }
  0xe8   :  { %1156 = vmatmul.mubr.f32.vlgmr.msra.gmra.mrb[8].mxu1 %v744_v39  ;;  %2017 = vmatpush3.bf16.msra.mxu0 %v2016_v41  ;;  %v2771_v58 = vpop.f32.mrb[2].mxu0  ;;  %v831_v39 = vld [vmem:[%s3361_s3 + $0x248] sm:$0xff] }
  0xe9   :  { %2049 = vmatpush3.bf16.msra.mxu1 %v2048_v44  ;;  %2019 = vmatprep.subr.bf16.mxu0 %v2018_v45  ;;  %v2782_v0 = vpop.f32.mrb[2].mxu1  ;;  %v384_v1 = vpop.f32.mrb[3].mxu0  ;;  %v2062_v44 = vpack.c.bf16 %v879_v32, %v878_v11  ;;  %v863_v45 = vld [vmem:[%s3361_s3 + $0x348] sm:$0xff]  ;;  %v117_v11 = vrot.slane %v2695_v12, %v116_v7  ;;  %v869_v12 = vld [vmem:[%s3361_s3 + $0x378] sm:$0xff] }
  0xea   :  { %2051 = vmatprep.subr.bf16.mxu1 %v2050_v49  ;;  %v385_v4 = vadd.f32 %v384_v1, %v113_v53  ;;  %v455_v5 = vpop.f32.mrb[3].mxu1  ;;  %v2032_v53 = vpack.c.bf16 %v831_v39, %v830_v13  ;;  %v2064_v54 = vpack.c.bf16 %v863_v45, %v862_v40  ;;  %v851_v1 = vld [vmem:[%s3361_s3 + $0x2e8] sm:$0xff]  ;;  %v868_v13 = vld [vmem:[%s3361_s3 + $0x370] sm:$0xff]  ;;  %v902_v40 = vld [vmem:[%s3361_s3 + $0x480] sm:$0xff]  ;;  %v383_v45 = vadd.f32 %v2771_v58, %v109_v29 }
  0xeb   :  { %v456_v16 = vadd.f32 %v455_v5, %v121_v55  ;;  %v2034_v55 = vpack.c.bf16 %v849_v47, %v848_v46  ;;  %v2038_v9 = vpack.c.bf16 %v851_v1, %v850_v63  ;;  %v934_v46 = vld [vmem:[%s3361_s3 + $0x580] sm:$0xff]  ;;  %v935_v47 = vld [vmem:[%s3361_s3 + $0x588] sm:$0xff]  ;;  %v454_v51 = vadd.f32 %v2782_v0, %v117_v11 }
  0xec   :  { %2021 = vmatpush3.bf16.msra.mxu0 %v2020_v56  ;;  %v747_v18 = vmax.f32 %v385_v4, 0.0  ;;  %v832_v56 = vld [vmem:[%s3361_s3 + $0x250] sm:$0xff]  ;;  %v2110_v0 = vpack.c.bf16 %v935_v47, %v934_v46  ;;  %v891_v29 = vld [vmem:[%s3361_s3 + $0x428] sm:$0xff]  ;;  %v910_v46 = vld [vmem:[%s3361_s3 + $0x4c0] sm:$0xff] }
  0xed   :  { %2053 = vmatpush3.bf16.msra.mxu1 %v2052_v59  ;;  %2023 = vmatprep.subr.bf16.mxu0 %v2022_v60  ;;  %v749_v24 = vmax.f32 %v456_v16, 0.0  ;;  %v864_v59 = vld [vmem:[%s3361_s3 + $0x350] sm:$0xff]  ;;  %v141_v60 = vrot.slane %v2793_v6, %v108_v52  ;;  %v2036_v4 = vpack.c.bf16 %v833_v57, %v832_v56  ;;  %v834_v16 = vld [vmem:[%s3361_s3 + $0x260] sm:$0xff]  ;;  %v905_v56 = vld [vmem:[%s3361_s3 + $0x498] sm:$0xff]  ;;  %v748_v63 = vmax.f32 %v454_v51, 0.0 }
  0xee   :  { %2055 = vmatprep.subr.bf16.mxu1 %v2054_v2  ;;  %1225 = vmatprep.mubr.f32.mxu0 %v747_v18  ;;  %v149_v2 = vrot.slane %v2793_v6, %v116_v7  ;;  %v2068_v8 = vpack.c.bf16 %v865_v62, %v864_v59  ;;  %v866_v18 = vld [vmem:[%s3361_s3 + $0x360] sm:$0xff]  ;;  %v887_v7 = vld [vmem:[%s3361_s3 + $0x408] sm:$0xff]  ;;  %v746_v59 = vmax.f32 %v383_v45, 0.0  ;;  %v925_v45 = vld [vmem:[%s3361_s3 + $0x538] sm:$0xff] }
  0xef   :  { %1295 = vmatprep.mubr.f32.mxu1 %v749_v24  ;;  %v852_v24 = vld [vmem:[%s3361_s3 + $0x2f0] sm:$0xff]  ;;  %v923_v11 = vld [vmem:[%s3361_s3 + $0x528] sm:$0xff] }
  0xf0   :  { %2025 = vmatpush3.bf16.msra.mxu0 %v2024_v17  ;;  %v524_v35 = vpop.f32.mrb[4].mxu0  ;;  %v835_v17 = vld [vmem:[%s3361_s3 + $0x268] sm:$0xff] }
  0xf1   :  { %2057 = vmatpush3.bf16.msra.mxu1 %v2056_v19  ;;  %2027 = vmatprep.subr.bf16.mxu0 %v2026_v20  ;;  %v2840_v41 = vadd.f32 %v524_v35, %v125_v25  ;;  %v595_v42 = vpop.f32.mrb[4].mxu1  ;;  %v2842_v43 = vpop.f32.mrb[5].mxu0  ;;  %v853_v25 = vld [vmem:[%s3361_s3 + $0x2f8] sm:$0xff]  ;;  %v2040_v32 = vpack.c.bf16 %v835_v17, %v834_v16  ;;  %v938_v17 = vld [vmem:[%s3361_s3 + $0x5a0] sm:$0xff]  ;;  %v911_v47 = vld [vmem:[%s3361_s3 + $0x4c8] sm:$0xff] }
  0xf2   :  { %2059 = vmatprep.subr.bf16.mxu1 %v2058_v27  ;;  %v2853_v48 = vadd.f32 %v595_v42, %v133_v31  ;;  %v2855_v49 = vpop.f32.mrb[5].mxu1  ;;  %v885_v31 = vld [vmem:[%s3361_s3 + $0x3f8] sm:$0xff]  ;;  %v2042_v35 = vpack.c.bf16 %v853_v25, %v852_v24  ;;  %v903_v42 = vld [vmem:[%s3361_s3 + $0x488] sm:$0xff]  ;;  %v890_v25 = vld [vmem:[%s3361_s3 + $0x420] sm:$0xff] }
  0xf3   :  { %v2074_v39 = vpack.c.bf16 %v885_v31, %v884_v30  ;;  %v2078_v58 = vpack.c.bf16 %v903_v42, %v902_v40  ;;  %v598_v62 = vadd.f32 %v2855_v49, %v137_v50  ;;  %v922_v30 = vld [vmem:[%s3361_s3 + $0x520] sm:$0xff]  ;;  %v893_v40 = vld [vmem:[%s3361_s3 + $0x438] sm:$0xff]  ;;  %v924_v42 = vld [vmem:[%s3361_s3 + $0x530] sm:$0xff] }
  0xf4   :  { %2029 = vmatpush3.bf16.msra.mxu0 %v2028_v33  ;;  %v2072_v33 = vpack.c.bf16 %v867_v23, %v866_v18  ;;  %v939_v18 = vld [vmem:[%s3361_s3 + $0x5a8] sm:$0xff]  ;;  %v942_v50 = vld [vmem:[%s3361_s3 + $0x5c0] sm:$0xff] }
  0xf5   :  { %2061 = vmatpush3.bf16.msra.mxu1 %v2060_v36  ;;  %2031 = vmatprep.subr.bf16.mxu0 %v2030_v37  ;;  %v836_v36 = vld [vmem:[%s3361_s3 + $0x270] sm:$0xff]  ;;  %v837_v37 = vld [vmem:[%s3361_s3 + $0x278] sm:$0xff]  ;;  %v2118_v31 = vpack.c.bf16 %v939_v18, %v938_v17  ;;  %v943_v51 = vld [vmem:[%s3361_s3 + $0x5c8] sm:$0xff] }
  0xf6   :  { %2063 = vmatprep.subr.bf16.mxu1 %v2062_v44  ;;  %v129_v44 = vrot.slane %v2793_v6, %v96_v14  ;;  %v2044_v52 = vpack.c.bf16 %v837_v37, %v836_v36  ;;  %v2076_v14 = vpack.c.bf16 %v869_v12, %v868_v13  ;;  %v941_v36 = vld [vmem:[%s3361_s3 + $0x5b8] sm:$0xff]  ;;  %v2088_v37 = vpack.c.bf16 %v891_v29, %v890_v25  ;;  %v892_v12 = vld [vmem:[%s3361_s3 + $0x430] sm:$0xff]  ;;  %v898_v17 = vld [vmem:[%s3361_s3 + $0x460] sm:$0xff] }
  0xf7   :  { %v2120_v13 = vpack.c.bf16 %v923_v11, %v922_v30  ;;  %v899_v18 = vld [vmem:[%s3361_s3 + $0x468] sm:$0xff]  ;;  %v917_v25 = vld [vmem:[%s3361_s3 + $0x4f8] sm:$0xff]  ;;  %v948_v29 = vld [vmem:[%s3361_s3 + $0x5f0] sm:$0xff] }
  0xf8   :  { %2033 = vmatpush3.bf16.msra.mxu0 %v2032_v53  ;;  %v666_v5 = vpop.f32.mrb[6].mxu0  ;;  %v886_v53 = vld [vmem:[%s3361_s3 + $0x400] sm:$0xff]  ;;  %v527_v57 = vadd.f32 %v2842_v43, %v129_v44  ;;  %v888_v43 = vld [vmem:[%s3361_s3 + $0x410] sm:$0xff]  ;;  %v949_v30 = vld [vmem:[%s3361_s3 + $0x5f8] sm:$0xff] }
  0xf9   :  { %2065 = vmatpush3.bf16.msra.mxu1 %v2064_v54  ;;  %2035 = vmatprep.subr.bf16.mxu0 %v2034_v55  ;;  %v2900_v19 = vadd.f32 %v666_v5, %v141_v60  ;;  %v2902_v20 = vpop.f32.mrb[7].mxu0  ;;  %v737_v21 = vpop.f32.mrb[6].mxu1  ;;  %v919_v54 = vld [vmem:[%s3361_s3 + $0x508] sm:$0xff]  ;;  %v904_v55 = vld [vmem:[%s3361_s3 + $0x490] sm:$0xff]  ;;  %v2080_v1 = vpack.c.bf16 %v887_v7, %v886_v53  ;;  %v921_v5 = vld [vmem:[%s3361_s3 + $0x518] sm:$0xff] }
  0xfa   :  { %2067 = vmatprep.subr.bf16.mxu1 %v2066_v61  ;;  %v2913_v27 = vadd.f32 %v737_v21, %v149_v2  ;;  %v2915_v28 = vpop.f32.mrb[7].mxu1  ;;  %v936_v60 = vld [vmem:[%s3361_s3 + $0x590] sm:$0xff]  ;;  %v937_v61 = vld [vmem:[%s3361_s3 + $0x598] sm:$0xff]  ;;  %v2112_v2 = vpack.c.bf16 %v919_v54, %v918_v15  ;;  %v2082_v26 = vpack.c.bf16 %v905_v56, %v904_v55  ;;  %v751_v16 = vmax.f32 %v527_v57, 0.0  ;;  %v894_v53 = vld [vmem:[%s3361_s3 + $0x440] sm:$0xff] }
  0xfb   :  { %v2114_v49 = vpack.c.bf16 %v937_v61, %v936_v60  ;;  %v753_v21 = vmax.f32 %v598_v62, 0.0  ;;  %v895_v7 = vld [vmem:[%s3361_s3 + $0x448] sm:$0xff]  ;;  %v926_v15 = vld [vmem:[%s3361_s3 + $0x540] sm:$0xff]  ;;  %v912_v55 = vld [vmem:[%s3361_s3 + $0x4d0] sm:$0xff] }
  0xfc   :  { %2037 = vmatpush3.bf16.msra.mxu0 %v2036_v4  ;;  %v920_v4 = vld [vmem:[%s3361_s3 + $0x510] sm:$0xff]  ;;  %v927_v54 = vld [vmem:[%s3361_s3 + $0x548] sm:$0xff]  ;;  %v913_v56 = vld [vmem:[%s3361_s3 + $0x4d8] sm:$0xff]  ;;  %v2096_v60 = vpack.c.bf16 %v895_v7, %v894_v53  ;;  %v750_v53 = vmax.f32 %v2840_v41, 0.0 }
  0xfd   :  { %2069 = vmatpush3.bf16.msra.mxu1 %v2068_v8  ;;  %2039 = vmatprep.subr.bf16.mxu0 %v2038_v9  ;;  %v906_v8 = vld [vmem:[%s3361_s3 + $0x4a0] sm:$0xff]  ;;  %v907_v9 = vld [vmem:[%s3361_s3 + $0x4a8] sm:$0xff]  ;;  %v2116_v23 = vpack.c.bf16 %v921_v5, %v920_v4  ;;  %v944_v57 = vld [vmem:[%s3361_s3 + $0x5d0] sm:$0xff]  ;;  %v2128_v61 = vpack.c.bf16 %v927_v54, %v926_v15  ;;  %v2098_v62 = vpack.c.bf16 %v913_v56, %v912_v55  ;;  %v752_v54 = vmax.f32 %v2853_v48, 0.0 }
  0xfe   :  { %2071 = vmatprep.subr.bf16.mxu1 %v2070_v22  ;;  %v2084_v22 = vpack.c.bf16 %v889_v3, %v888_v43  ;;  %v2086_v24 = vpack.c.bf16 %v907_v9, %v906_v8  ;;  %v929_v43 = vld [vmem:[%s3361_s3 + $0x558] sm:$0xff]  ;;  %v914_v3 = vld [vmem:[%s3361_s3 + $0x4e0] sm:$0xff]  ;;  %v915_v4 = vld [vmem:[%s3361_s3 + $0x4e8] sm:$0xff] }
  0xff   :  { %v947_v5 = vld [vmem:[%s3361_s3 + $0x5e8] sm:$0xff]  ;;  %v1000_v7 = vld [vmem:[%s3361_s3 + $0x790] sm:$0xff]  ;;  %v1001_v15 = vld [vmem:[%s3361_s3 + $0x798] sm:$0xff] }
 0x100   :  { %2041 = vmatpush3.bf16.msra.mxu0 %v2040_v32  ;;  %v908_v32 = vld [vmem:[%s3361_s3 + $0x4b0] sm:$0xff]  ;;  %v2178_v48 = vpack.c.bf16 %v1001_v15, %v1000_v7  ;;  %v978_v7 = vld [vmem:[%s3361_s3 + $0x6e0] sm:$0xff]  ;;  %v979_v15 = vld [vmem:[%s3361_s3 + $0x6e8] sm:$0xff] }
 0x101   :  { %2073 = vmatpush3.bf16.msra.mxu1 %v2072_v33  ;;  %2043 = vmatprep.subr.bf16.mxu0 %v2042_v35  ;;  %v909_v33 = vld [vmem:[%s3361_s3 + $0x4b8] sm:$0xff]  ;;  %v940_v35 = vld [vmem:[%s3361_s3 + $0x5b0] sm:$0xff] }
 0x102   :  { %2075 = vmatprep.subr.bf16.mxu1 %v2074_v39  ;;  %v2090_v39 = vpack.c.bf16 %v909_v33, %v908_v32  ;;  %v2122_v44 = vpack.c.bf16 %v941_v36, %v940_v35  ;;  %v900_v33 = vld [vmem:[%s3361_s3 + $0x470] sm:$0xff]  ;;  %v901_v35 = vld [vmem:[%s3361_s3 + $0x478] sm:$0xff] }
 0x103   :  { %v932_v36 = vld [vmem:[%s3361_s3 + $0x570] sm:$0xff] }
 0x104   :  { %2045 = vmatpush3.bf16.msra.mxu0 %v2044_v52  ;;  %v2092_v52 = vpack.c.bf16 %v893_v40, %v892_v12  ;;  %v967_v12 = vld [vmem:[%s3361_s3 + $0x688] sm:$0xff]  ;;  %v145_v40 = vrot.slane %v2793_v6, %v112_v34  ;;  %v950_v34 = vld [vmem:[%s3361_s3 + $0x600] sm:$0xff]  ;;  %v952_v41 = vld [vmem:[%s3361_s3 + $0x610] sm:$0xff] }
 0x105   :  { %2077 = vmatpush3.bf16.msra.mxu1 %v2076_v14  ;;  %2079 = vmatprep.subr.bf16.mxu0 %v2078_v58  ;;  %v2124_v14 = vpack.c.bf16 %v925_v45, %v924_v42  ;;  %v2094_v58 = vpack.c.bf16 %v911_v47, %v910_v46  ;;  %v998_v42 = vld [vmem:[%s3361_s3 + $0x780] sm:$0xff]  ;;  %v153_v45 = vrot.slane %v2793_v6, %v120_v38  ;;  %v983_v6 = vld [vmem:[%s3361_s3 + $0x708] sm:$0xff] }
 0x106   :  { %2111 = vmatprep.subr.bf16.mxu1 %v2110_v0  ;;  %v2126_v0 = vpack.c.bf16 %v943_v51, %v942_v50  ;;  %v2108_v46 = vpack.c.bf16 %v901_v35, %v900_v33  ;;  %v951_v51 = vld [vmem:[%s3361_s3 + $0x608] sm:$0xff]  ;;  %v2176_v56 = vpack.c.bf16 %v983_v6, %v982_v10  ;;  %v1006_v35 = vld [vmem:[%s3361_s3 + $0x7c0] sm:$0xff]  ;;  %v960_v6 = vld [vmem:[%s3361_s3 + $0x650] sm:$0xff] }
 0x107   :  { %1226 = vmatmul.mubr.f32.vlgmr.msra.gmra.mrb[10].mxu0 %v746_v59  ;;  %v945_v59 = vld [vmem:[%s3361_s3 + $0x5d8] sm:$0xff]  ;;  %v2144_v55 = vpack.c.bf16 %v951_v51, %v950_v34  ;;  %v975_v33 = vld [vmem:[%s3361_s3 + $0x6c8] sm:$0xff] }
 0x108   :  { %1296 = vmatmul.mubr.f32.vlgmr.msra.gmra.mrb[10].mxu1 %v748_v63  ;;  %2081 = vmatpush3.bf16.msra.mxu0 %v2080_v1  ;;  %v896_v63 = vld [vmem:[%s3361_s3 + $0x450] sm:$0xff]  ;;  %v897_v1 = vld [vmem:[%s3361_s3 + $0x458] sm:$0xff] }
 0x109   :  { %2113 = vmatpush3.bf16.msra.mxu1 %v2112_v2  ;;  %2083 = vmatprep.subr.bf16.mxu0 %v2082_v26  ;;  %v928_v2 = vld [vmem:[%s3361_s3 + $0x550] sm:$0xff]  ;;  %v2130_v26 = vpack.c.bf16 %v945_v59, %v944_v57  ;;  %v2100_v8 = vpack.c.bf16 %v897_v1, %v896_v63  ;;  %v953_v57 = vld [vmem:[%s3361_s3 + $0x618] sm:$0xff]  ;;  %v1002_v63 = vld [vmem:[%s3361_s3 + $0x7a0] sm:$0xff] }
 0x10a   :  { %2115 = vmatprep.subr.bf16.mxu1 %v2114_v49  ;;  %1365 = vmatprep.mubr.f32.mxu0 %v751_v16  ;;  %v946_v49 = vld [vmem:[%s3361_s3 + $0x5e0] sm:$0xff]  ;;  %v2132_v9 = vpack.c.bf16 %v929_v43, %v928_v2  ;;  %v2102_v16 = vpack.c.bf16 %v915_v4, %v914_v3  ;;  %v985_v59 = vld [vmem:[%s3361_s3 + $0x718] sm:$0xff]  ;;  %v1003_v1 = vld [vmem:[%s3361_s3 + $0x7a8] sm:$0xff] }
 0x10b   :  { %1435 = vmatprep.mubr.f32.mxu1 %v753_v21  ;;  %v930_v21 = vld [vmem:[%s3361_s3 + $0x560] sm:$0xff]  ;;  %v1009_v34 = vld [vmem:[%s3361_s3 + $0x7d8] sm:$0xff] }
 0x10c   :  { %2085 = vmatpush3.bf16.msra.mxu0 %v2084_v22  ;;  %v2134_v22 = vpack.c.bf16 %v947_v5, %v946_v49  ;;  %v954_v4 = vld [vmem:[%s3361_s3 + $0x620] sm:$0xff]  ;;  %v955_v49 = vld [vmem:[%s3361_s3 + $0x628] sm:$0xff] }
 0x10d   :  { %2117 = vmatpush3.bf16.msra.mxu1 %v2116_v23  ;;  %2087 = vmatprep.subr.bf16.mxu0 %v2086_v24  ;;  %v931_v23 = vld [vmem:[%s3361_s3 + $0x568] sm:$0xff]  ;;  %v916_v24 = vld [vmem:[%s3361_s3 + $0x4f0] sm:$0xff]  ;;  %v986_v5 = vld [vmem:[%s3361_s3 + $0x720] sm:$0xff] }
 0x10e   :  { %2119 = vmatprep.subr.bf16.mxu1 %v2118_v31  ;;  %v2104_v31 = vpack.c.bf16 %v899_v18, %v898_v17  ;;  %v2136_v11 = vpack.c.bf16 %v931_v23, %v930_v21  ;;  %v2106_v32 = vpack.c.bf16 %v917_v25, %v916_v24  ;;  %v973_v17 = vld [vmem:[%s3361_s3 + $0x6b8] sm:$0xff]  ;;  %v1004_v18 = vld [vmem:[%s3361_s3 + $0x7b0] sm:$0xff] }
 0x10f   :  { %v1005_v21 = vld [vmem:[%s3361_s3 + $0x7b8] sm:$0xff]  ;;  %v956_v25 = vld [vmem:[%s3361_s3 + $0x630] sm:$0xff] }
 0x110   :  { %2089 = vmatpush3.bf16.msra.mxu0 %v2088_v37  ;;  %v2138_v37 = vpack.c.bf16 %v949_v30, %v948_v29  ;;  %v957_v29 = vld [vmem:[%s3361_s3 + $0x638] sm:$0xff]  ;;  %v988_v30 = vld [vmem:[%s3361_s3 + $0x730] sm:$0xff] }
 0x111   :  { %2121 = vmatpush3.bf16.msra.mxu1 %v2120_v13  ;;  %2091 = vmatprep.subr.bf16.mxu0 %v2090_v39  ;;  %v933_v13 = vld [vmem:[%s3361_s3 + $0x578] sm:$0xff]  ;;  %v966_v39 = vld [vmem:[%s3361_s3 + $0x680] sm:$0xff] }
 0x112   :  { %2123 = vmatprep.subr.bf16.mxu1 %v2122_v44  ;;  %v999_v44 = vld [vmem:[%s3361_s3 + $0x788] sm:$0xff]  ;;  %v2140_v47 = vpack.c.bf16 %v933_v13, %v932_v36  ;;  %v2142_v50 = vpack.c.bf16 %v967_v12, %v966_v39  ;;  %v958_v12 = vld [vmem:[%s3361_s3 + $0x640] sm:$0xff] }
 0x113   :  { %v2174_v38 = vpack.c.bf16 %v999_v44, %v998_v42  ;;  %v1007_v36 = vld [vmem:[%s3361_s3 + $0x7c8] sm:$0xff]  ;;  %v990_v42 = vld [vmem:[%s3361_s3 + $0x740] sm:$0xff] }
 0x114   :  { %2093 = vmatpush3.bf16.msra.mxu0 %v2092_v52  ;;  %v968_v52 = vld [vmem:[%s3361_s3 + $0x690] sm:$0xff]  ;;  %v2190_v44 = vpack.c.bf16 %v1007_v36, %v1006_v35 }
 0x115   :  { %2125 = vmatpush3.bf16.msra.mxu1 %v2124_v14  ;;  %2095 = vmatprep.subr.bf16.mxu0 %v2094_v58  ;;  %v969_v14 = vld [vmem:[%s3361_s3 + $0x698] sm:$0xff]  ;;  %v669_v58 = vadd.f32 %v2902_v20, %v145_v40  ;;  %v959_v40 = vld [vmem:[%s3361_s3 + $0x648] sm:$0xff] }
 0x116   :  { %2127 = vmatprep.subr.bf16.mxu1 %v2126_v0  ;;  %v740_v0 = vadd.f32 %v2915_v28, %v153_v45  ;;  %v2146_v20 = vpack.c.bf16 %v969_v14, %v968_v52  ;;  %v984_v28 = vld [vmem:[%s3361_s3 + $0x710] sm:$0xff]  ;;  %v991_v45 = vld [vmem:[%s3361_s3 + $0x748] sm:$0xff]  ;;  %v2160_v51 = vpack.c.bf16 %v959_v40, %v958_v12  ;;  %v961_v52 = vld [vmem:[%s3361_s3 + $0x658] sm:$0xff] }
 0x117   :  { %v2180_v43 = vpack.c.bf16 %v985_v59, %v984_v28  ;;  %v2192_v10 = vpack.c.bf16 %v991_v45, %v990_v42  ;;  %v992_v14 = vld [vmem:[%s3361_s3 + $0x750] sm:$0xff]  ;;  %v994_v28 = vld [vmem:[%s3361_s3 + $0x760] sm:$0xff]  ;;  %v995_v59 = vld [vmem:[%s3361_s3 + $0x768] sm:$0xff] }
 0x118   :  { %2097 = vmatpush3.bf16.msra.mxu0 %v2096_v60  ;;  %v970_v60 = vld [vmem:[%s3361_s3 + $0x6a0] sm:$0xff]  ;;  %v757_v2 = vmax.f32 %v740_v0, 0.0 }
 0x119   :  { %2129 = vmatpush3.bf16.msra.mxu1 %v2128_v61  ;;  %2099 = vmatprep.subr.bf16.mxu0 %v2098_v62  ;;  %v971_v61 = vld [vmem:[%s3361_s3 + $0x6a8] sm:$0xff]  ;;  %v755_v62 = vmax.f32 %v669_v58, 0.0  ;;  %v1010_v0 = vld [vmem:[%s3361_s3 + $0x7e0] sm:$0xff] }
 0x11a   :  { %2131 = vmatprep.subr.bf16.mxu1 %v2130_v26  ;;  %v2148_v26 = vpack.c.bf16 %v953_v57, %v952_v41  ;;  %v2150_v3 = vpack.c.bf16 %v971_v61, %v970_v60  ;;  %v962_v41 = vld [vmem:[%s3361_s3 + $0x660] sm:$0xff]  ;;  %v963_v57 = vld [vmem:[%s3361_s3 + $0x668] sm:$0xff]  ;;  %v980_v60 = vld [vmem:[%s3361_s3 + $0x6f0] sm:$0xff] }
 0x11b   :  { %v981_v61 = vld [vmem:[%s3361_s3 + $0x6f8] sm:$0xff] }
 0x11c   :  { %2101 = vmatpush3.bf16.msra.mxu0 %v2100_v8  ;;  %v2182_v8 = vpack.c.bf16 %v1003_v1, %v1002_v63  ;;  %v1013_v63 = vld [vmem:[%s3361_s3 + $0x7f8] sm:$0xff]  ;;  %v2168_v1 = vpack.c.bf16 %v963_v57, %v962_v41 }
 0x11d   :  { %2133 = vmatpush3.bf16.msra.mxu1 %v2132_v9  ;;  %2103 = vmatprep.subr.bf16.mxu0 %v2102_v16  ;;  %v987_v9 = vld [vmem:[%s3361_s3 + $0x728] sm:$0xff]  ;;  %v972_v16 = vld [vmem:[%s3361_s3 + $0x6b0] sm:$0xff] }
 0x11e   :  { %2135 = vmatprep.subr.bf16.mxu1 %v2134_v22  ;;  %v2152_v22 = vpack.c.bf16 %v955_v49, %v954_v4  ;;  %v2184_v23 = vpack.c.bf16 %v987_v9, %v986_v5  ;;  %v2154_v24 = vpack.c.bf16 %v973_v17, %v972_v16  ;;  %v996_v49 = vld [vmem:[%s3361_s3 + $0x770] sm:$0xff]  ;;  %v997_v5 = vld [vmem:[%s3361_s3 + $0x778] sm:$0xff]  ;;  %v756_v16 = vmax.f32 %v2913_v27, 0.0 }
 0x11f   :  { %v2204_v9 = vpack.c.bf16 %v997_v5, %v996_v49  ;;  %v754_v17 = vmax.f32 %v2900_v19, 0.0 }
 0x120   :  { %2105 = vmatpush3.bf16.msra.mxu0 %v2104_v31  ;;  %v2186_v31 = vpack.c.bf16 %v1005_v21, %v1004_v18 }
 0x121   :  { %2137 = vmatpush3.bf16.msra.mxu1 %v2136_v11  ;;  %2107 = vmatprep.subr.bf16.mxu0 %v2106_v32  ;;  %v989_v11 = vld [vmem:[%s3361_s3 + $0x738] sm:$0xff]  ;;  %v974_v32 = vld [vmem:[%s3361_s3 + $0x6c0] sm:$0xff] }
 0x122   :  { %2139 = vmatprep.subr.bf16.mxu1 %v2138_v37  ;;  %v2156_v37 = vpack.c.bf16 %v957_v29, %v956_v25  ;;  %v2188_v13 = vpack.c.bf16 %v989_v11, %v988_v30  ;;  %v2158_v39 = vpack.c.bf16 %v975_v33, %v974_v32 }
 0x124   :  { %2109 = vmatpush3.bf16.msra.mxu0 %v2108_v46  ;;  %v976_v46 = vld [vmem:[%s3361_s3 + $0x6d0] sm:$0xff] }
 0x125   :  { %2141 = vmatpush3.bf16.msra.mxu1 %v2140_v47  ;;  %2143 = vmatprep.subr.bf16.mxu0 %v2142_v50  ;;  %v977_v47 = vld [vmem:[%s3361_s3 + $0x6d8] sm:$0xff]  ;;  %v1008_v50 = vld [vmem:[%s3361_s3 + $0x7d0] sm:$0xff] }
 0x126   :  { %2175 = vmatprep.subr.bf16.mxu1 %v2174_v38  ;;  %v2162_v38 = vpack.c.bf16 %v977_v47, %v976_v46  ;;  %v2194_v58 = vpack.c.bf16 %v1009_v34, %v1008_v50 }
 0x127   :  { %1366 = vmatmul.mubr.f32.vlgmr.msra.gmra.mrb[12].mxu0 %v750_v53  ;;  %v993_v53 = vld [vmem:[%s3361_s3 + $0x758] sm:$0xff] }
 0x128   :  { %1436 = vmatmul.mubr.f32.vlgmr.msra.gmra.mrb[12].mxu1 %v752_v54  ;;  %2145 = vmatpush3.bf16.msra.mxu0 %v2144_v55  ;;  %v1011_v54 = vld [vmem:[%s3361_s3 + $0x7e8] sm:$0xff]  ;;  %v2164_v55 = vpack.c.bf16 %v961_v52, %v960_v6 }
 0x129   :  { %2177 = vmatpush3.bf16.msra.mxu1 %v2176_v56  ;;  %2147 = vmatprep.subr.bf16.mxu0 %v2146_v20  ;;  %v2196_v56 = vpack.c.bf16 %v993_v53, %v992_v14  ;;  %v2166_v20 = vpack.c.bf16 %v979_v15, %v978_v7 }
 0x12a   :  { %2179 = vmatprep.subr.bf16.mxu1 %v2178_v48  ;;  %1505 = vmatprep.mubr.f32.mxu0 %v755_v62  ;;  %v2198_v48 = vpack.c.bf16 %v1011_v54, %v1010_v0  ;;  %v1012_v62 = vld [vmem:[%s3361_s3 + $0x7f0] sm:$0xff] }
 0x12b   :  { %1575 = vmatprep.mubr.f32.mxu1 %v757_v2  ;;  %v2200_v2 = vpack.c.bf16 %v995_v59, %v994_v28  ;;  %v2202_v4 = vpack.c.bf16 %v1013_v63, %v1012_v62 }
 0x12c   :  { %2149 = vmatpush3.bf16.msra.mxu0 %v2148_v26  ;;  %v2170_v26 = vpack.c.bf16 %v981_v61, %v980_v60 }
 0x12d   :  { %2181 = vmatpush3.bf16.msra.mxu1 %v2180_v43  ;;  %2151 = vmatprep.subr.bf16.mxu0 %v2150_v3  ;;  %v964_v43 = vld [vmem:[%s3361_s3 + $0x670] sm:$0xff]  ;;  %v965_v3 = vld [vmem:[%s3361_s3 + $0x678] sm:$0xff]  ;;  %s2233_s3 = smov [#allocation2]  }
 0x12e   :  { %2183 = vmatprep.subr.bf16.mxu1 %v2182_v8  ;;  %v2172_v8 = vpack.c.bf16 %v965_v3, %v964_v43 }
 0x130   :  { %2153 = vmatpush3.bf16.msra.mxu0 %v2152_v22  ;;  %v1605_v22 = vld [vmem:[%s3362_s4] ss:$0 sm:$0xff]  ;;  %s1589_s4 = sshll.u32 %s2233_s3, 4  ;;  %s1590_s4 = int_to_ptr.vmem [resolvable:$true] %s1589_s4 }
 0x131   :  { %2185 = vmatpush3.bf16.msra.mxu1 %v2184_v23  ;;  %2155 = vmatprep.subr.bf16.mxu0 %v2154_v24  ;;  %s2208_s12 = scalar_lea.vmem %s1590_s4, 128  ;;  %p2213_p1 = scmp.lt.s32.totalorder %s1590_s4, %s1590_s4 }
 0x132   :  { %2187 = vmatprep.subr.bf16.mxu1 %v2186_v31  ;;  %p2209_p0 = scmp.ne.s32.totalorder %s1590_s4, %s2208_s12  ;;  %p2214_p2 = scmp.lt.s32.totalorder %s2208_s12, %s2208_s12 }
 0x134   :  { %2157 = vmatpush3.bf16.msra.mxu0 %v2156_v37  ;;  %p2215_p3 = por %p2214_p2, %p2213_p1 }
 0x135   :  { %2189 = vmatpush3.bf16.msra.mxu1 %v2188_v13  ;;  %2159 = vmatprep.subr.bf16.mxu0 %v2158_v39 }
 0x136   :  { %2191 = vmatprep.subr.bf16.mxu1 %v2190_v44  ;;  %p2216_p4 = pnand %p2215_p3, %p2209_p0 }
 0x138   :  { %2161 = vmatpush3.bf16.msra.mxu0 %v2160_v51 }
 0x139   :  { %2193 = vmatpush3.bf16.msra.mxu1 %v2192_v10  ;;  %2163 = vmatprep.subr.bf16.mxu0 %v2162_v38 }
 0x13a   :  { %2195 = vmatprep.subr.bf16.mxu1 %v2194_v58 }
 0x13c   :  { %2165 = vmatpush3.bf16.msra.mxu0 %v2164_v55 }
 0x13d   :  { %2197 = vmatpush3.bf16.msra.mxu1 %v2196_v56  ;;  %2167 = vmatprep.subr.bf16.mxu0 %v2166_v20 }
 0x13e   :  { %2199 = vmatprep.subr.bf16.mxu1 %v2198_v48 }
 0x140   :  { %2169 = vmatpush3.bf16.msra.mxu0 %v2168_v1 }
 0x141   :  { %2201 = vmatpush3.bf16.msra.mxu1 %v2200_v2  ;;  %2171 = vmatprep.subr.bf16.mxu0 %v2170_v26 }
 0x142   :  { %2203 = vmatprep.subr.bf16.mxu1 %v2202_v4 }
 0x144   :  { %2173 = vmatpush3.bf16.msra.mxu0 %v2172_v8 }
 0x145   :  { %2205 = vmatpush3.bf16.msra.mxu1 %v2204_v9 }
 0x147   :  { %1506 = vmatmul.mubr.f32.vlgmr.msra.gmra.mrb[14].mxu0 %v754_v17 }
 0x148   :  { %1576 = vmatmul.mubr.f32.vlgmr.msra.gmra.mrb[14].mxu1 %v756_v16 }
 0x1ba   :  { %v1638_v18 = vpop.f32.mrb[8].mxu0 }
 0x1bb   :  { %v1673_v21 = vpop.f32.mrb[8].mxu1  ;;  %v1639_v23 = vpop.f32.mrb[9].mxu0 }
 0x1bc   :  { %v1640_v24 = vadd.f32 %v1639_v23, %v1638_v18  ;;  %v1674_v25 = vpop.f32.mrb[9].mxu1 }
 0x1bd   :  { %v1675_v29 = vadd.f32 %v1674_v25, %v1673_v21 }
 0x1be   :  { %v1088_v30 = vadd.f32 %v1640_v24, %v1605_v22 }
 0x1c0   :  { %v1158_v31 = vadd.f32 %v1675_v29, %v1088_v30 }
 0x1da   :  { %v1708_v11 = vpop.f32.mrb[10].mxu0 }
 0x1db   :  { %v1743_v27 = vpop.f32.mrb[10].mxu1  ;;  %v1709_v32 = vpop.f32.mrb[11].mxu0 }
 0x1dc   :  { %v1710_v33 = vadd.f32 %v1709_v32, %v1708_v11  ;;  %v1744_v19 = vpop.f32.mrb[11].mxu1 }
 0x1dd   :  { %v1745_v35 = vadd.f32 %v1744_v19, %v1743_v27 }
 0x1de   :  { %v1228_v36 = vadd.f32 %v1710_v33, %v1158_v31 }
 0x1e0   :  { %v1298_v37 = vadd.f32 %v1745_v35, %v1228_v36 }
 0x1fa   :  { %v1778_v13 = vpop.f32.mrb[12].mxu0 }
 0x1fb   :  { %v1813_v39 = vpop.f32.mrb[12].mxu1  ;;  %v1779_v12 = vpop.f32.mrb[13].mxu0 }
 0x1fc   :  { %v1780_v40 = vadd.f32 %v1779_v12, %v1778_v13  ;;  %v1814_v42 = vpop.f32.mrb[13].mxu1 }
 0x1fd   :  { %v1815_v44 = vadd.f32 %v1814_v42, %v1813_v39 }
 0x1fe   :  { %v1368_v45 = vadd.f32 %v1780_v40, %v1298_v37 }
 0x200   :  { %v1438_v46 = vadd.f32 %v1815_v44, %v1368_v45 }
 0x21a   :  { %v1848_v47 = vpop.f32.mrb[14].mxu0 }
 0x21b   :  { %v1883_v50 = vpop.f32.mrb[14].mxu1  ;;  %v1849_v34 = vpop.f32.mrb[15].mxu0 }
 0x21c   :  { %v1850_v51 = vadd.f32 %v1849_v34, %v1848_v47  ;;  %v1884_v10 = vpop.f32.mrb[15].mxu1 }
 0x21d   :  { %v1885_v38 = vadd.f32 %v1884_v10, %v1883_v50 }
 0x21e   :  { %v1508_v6 = vadd.f32 %v1850_v51, %v1438_v46 }
 0x220   :  { %v1578_v52 = vadd.f32 %v1885_v38, %v1508_v6 }
 0x222   :  { %1582 = vst.msk [vmem:[#allocation2] sm:$0xff] %vm1581_vm1, %v1578_v52 }
 0x223   :  { %2219 = shalt.err (!%p2216_p4)
}
 0x224   :  { %s2220_s15 = scalar_lea.hbm %s3363_s5, 128 }
 0x225   :  { %p2221_p5 = scmp.ne.s32.totalorder %s3363_s5, %s2220_s15  ;;  %p2224_p6 = scmp.lt.u32.totalorder %s2220_s15, %s3363_s5 }
 0x227   :  { %p2226_p7 = pnand %p2224_p6, %p2221_p5 }
 0x229   :  { %2229 = shalt.err (!%p2226_p7)
}
 0x22a   :  { %1592 = dma.vmem_to_hbm [thread:$0]  %s1590_s4, 128, %s3363_s5, [#allocation3]  }
 0x22b   :  { %2230 = dma.done.wait [#allocation3], 128  }
 0x22c   :  { %2231 = vsyncadd [#allocation3], 4294967168 }
 0x22d   :  { %1596 = vsyncpa [#allocation3], 1 }

// kernel: tpu_custom_call.1
= control target key start
LH: loop header
LB: loop body
LE: loop exit
PB: predicated region body
PF: predicated region fallthrough
CT: control target
= control target key end

     0   :  { %v2232_v7 = vmov 0.0   ;;  %vm170_vm0 = vcmask 261120   ;;  %s3358_s0 = inlined_call_operand.vmem [shape: f32[8,32], index: 0, kind: input, shape index: {}]   ;;  %s3359_s1 = inlined_call_operand.vmem [shape: f32[32,2048], index: 1, kind: input, shape index: {}]   ;;  %s3360_s2 = inlined_call_operand.vmem [shape: f32[1,2048], index: 2, kind: input, shape index: {}]   ;;  %s3361_s3 = inlined_call_operand.vmem [shape: f32[2048,8], index: 3, kind: input, shape index: {}]   ;;  %s3362_s4 = inlined_call_operand.vmem [shape: f32[1,8], index: 4, kind: input, shape index: {}]   ;;  %s3363_s5 = inlined_call_operand.hbm [shape: f32[8,8], index: 5, kind: output, shape index: {}]  }
   0x1   :  { %v23_v0 = vld [vmem:[%s3359_s1 + $0x8] sm:$0xff]  ;;  %v25_v2 = vld [vmem:[%s3359_s1 + $0x18] sm:$0xff]  ;;  %v22_v5 = vld [vmem:[%s3359_s1] sm:$0xff]  ;;  %238 = vmatprep.mubr.f32.mxu0 %v2232_v7  ;;  %309 = vmatprep.mubr.f32.mxu1 %v2232_v7 }
   0x2   :  { %v39_v1 = vld [vmem:[%s3359_s1 + $0x88] sm:$0xff]  ;;  %v41_v4 = vld [vmem:[%s3359_s1 + $0x98] sm:$0xff]  ;;  %v38_v6 = vld [vmem:[%s3359_s1 + $0x80] sm:$0xff] }
   0x3   :  { %v1886_v3 = vpack.c.bf16 %v39_v1, %v23_v0  ;;  %v1894_v8 = vpack.c.bf16 %v41_v4, %v25_v2  ;;  %v1888_v9 = vpack.c.bf16 %v38_v6, %v22_v5  ;;  %v24_v10 = vld [vmem:[%s3359_s1 + $0x10] sm:$0xff]  ;;  %v55_v12 = vld [vmem:[%s3359_s1 + $0x108] sm:$0xff]  ;;  %v57_v15 = vld [vmem:[%s3359_s1 + $0x118] sm:$0xff] }
   0x4   :  { %v40_v11 = vld [vmem:[%s3359_s1 + $0x90] sm:$0xff]  ;;  %v71_v14 = vld [vmem:[%s3359_s1 + $0x188] sm:$0xff]  ;;  %v73_v16 = vld [vmem:[%s3359_s1 + $0x198] sm:$0xff] }
   0x5   :  { %1887 = vmatprep.subr.bf16.mxu0 %v1886_v3  ;;  %v1896_v13 = vpack.c.bf16 %v40_v11, %v24_v10  ;;  %1895 = vmatprep.subr.bf16.mxu1 %v1894_v8  ;;  %v1890_v17 = vpack.c.bf16 %v71_v14, %v55_v12  ;;  %v1898_v18 = vpack.c.bf16 %v73_v16, %v57_v15  ;;  %v54_v19 = vld [vmem:[%s3359_s1 + $0x100] sm:$0xff]  ;;  %v56_v21 = vld [vmem:[%s3359_s1 + $0x110] sm:$0xff]  ;;  %v27_v24 = vld [vmem:[%s3359_s1 + $0x28] sm:$0xff] }
   0x6   :  { %1889 = vmatpush1.bf16.msra.mxu0 %v1888_v9  ;;  %v70_v20 = vld [vmem:[%s3359_s1 + $0x180] sm:$0xff]  ;;  %v72_v23 = vld [vmem:[%s3359_s1 + $0x190] sm:$0xff]  ;;  %v43_v27 = vld [vmem:[%s3359_s1 + $0xa8] sm:$0xff] }
   0x7   :  { %1897 = vmatpush1.bf16.msra.mxu1 %v1896_v13  ;;  %v1892_v22 = vpack.c.bf16 %v70_v20, %v54_v19  ;;  %1891 = vmatprep.subr.bf16.mxu0 %v1890_v17  ;;  %v1900_v25 = vpack.c.bf16 %v72_v23, %v56_v21  ;;  %v2320_v26 = vld [vmem:[%s3358_s0] sm:$0xff]  ;;  %v29_v28 = vld [vmem:[%s3359_s1 + $0x38] sm:$0xff]  ;;  %v1902_v30 = vpack.c.bf16 %v43_v27, %v27_v24  ;;  %v28_v34 = vld [vmem:[%s3359_s1 + $0x30] sm:$0xff] }
   0x8   :  { %1899 = vmatprep.subr.bf16.mxu1 %v1898_v18  ;;  %v45_v29 = vld [vmem:[%s3359_s1 + $0xb8] sm:$0xff]  ;;  %v26_v32 = vld [vmem:[%s3359_s1 + $0x20] sm:$0xff]  ;;  %v44_v36 = vld [vmem:[%s3359_s1 + $0xb0] sm:$0xff] }
   0x9   :  { %v1910_v31 = vpack.c.bf16 %v45_v29, %v29_v28  ;;  %v42_v33 = vld [vmem:[%s3359_s1 + $0xa0] sm:$0xff]  ;;  %v59_v37 = vld [vmem:[%s3359_s1 + $0x128] sm:$0xff]  ;;  %v1912_v39 = vpack.c.bf16 %v44_v36, %v28_v34  ;;  %v61_v41 = vld [vmem:[%s3359_s1 + $0x138] sm:$0xff] }
   0xa   :  { %1893 = vmatpush1.bf16.msra.mxu0 %v1892_v22  ;;  %v1904_v35 = vpack.c.bf16 %v42_v33, %v26_v32  ;;  %v75_v38 = vld [vmem:[%s3359_s1 + $0x1a8] sm:$0xff]  ;;  %v77_v42 = vld [vmem:[%s3359_s1 + $0x1b8] sm:$0xff]  ;;  %v58_v43 = vld [vmem:[%s3359_s1 + $0x120] sm:$0xff] }
   0xb   :  { %1901 = vmatpush1.bf16.msra.mxu1 %v1900_v25  ;;  %1903 = vmatprep.subr.bf16.mxu0 %v1902_v30  ;;  %v1906_v40 = vpack.c.bf16 %v75_v38, %v59_v37  ;;  %v1914_v44 = vpack.c.bf16 %v77_v42, %v61_v41  ;;  %v74_v45 = vld [vmem:[%s3359_s1 + $0x1a0] sm:$0xff]  ;;  %v60_v46 = vld [vmem:[%s3359_s1 + $0x130] sm:$0xff]  ;;  %v31_v48 = vld [vmem:[%s3359_s1 + $0x48] sm:$0xff] }
   0xc   :  { %1911 = vmatprep.subr.bf16.mxu1 %v1910_v31  ;;  %v76_v47 = vld [vmem:[%s3359_s1 + $0x1b0] sm:$0xff]  ;;  %v47_v49 = vld [vmem:[%s3359_s1 + $0xc8] sm:$0xff]  ;;  %v33_v50 = vld [vmem:[%s3359_s1 + $0x58] sm:$0xff]  ;;  %v1908_v51 = vpack.c.bf16 %v74_v45, %v58_v43 }
   0xd   :  { %1597 = vmatmul.mubr.msk.f32.vlgmr.msra.gmra.mrb[0].mxu0 %vm170_vm0, %v2320_v26  ;;  %v49_v52 = vld [vmem:[%s3359_s1 + $0xd8] sm:$0xff]  ;;  %v1916_v53 = vpack.c.bf16 %v76_v47, %v60_v46  ;;  %v1918_v54 = vpack.c.bf16 %v47_v49, %v31_v48  ;;  %v30_v55 = vld [vmem:[%s3359_s1 + $0x40] sm:$0xff]  ;;  %v32_v57 = vld [vmem:[%s3359_s1 + $0x50] sm:$0xff] }
   0xe   :  { %1598 = vmatmul.mubr.msk.f32.vlgmr.msra.gmra.mrb[0].mxu1 %vm170_vm0, %v2320_v26  ;;  %1905 = vmatpush1.bf16.msra.mxu0 %v1904_v35  ;;  %v46_v56 = vld [vmem:[%s3359_s1 + $0xc0] sm:$0xff]  ;;  %v1926_v58 = vpack.c.bf16 %v49_v52, %v33_v50  ;;  %v48_v59 = vld [vmem:[%s3359_s1 + $0xd0] sm:$0xff]  ;;  %v63_v60 = vld [vmem:[%s3359_s1 + $0x148] sm:$0xff] }
   0xf   :  { %1913 = vmatpush1.bf16.msra.mxu1 %v1912_v39  ;;  %1907 = vmatprep.subr.bf16.mxu0 %v1906_v40  ;;  %v79_v61 = vld [vmem:[%s3359_s1 + $0x1c8] sm:$0xff]  ;;  %v65_v62 = vld [vmem:[%s3359_s1 + $0x158] sm:$0xff]  ;;  %v1920_v0 = vpack.c.bf16 %v46_v56, %v30_v55  ;;  %v1928_v1 = vpack.c.bf16 %v48_v59, %v32_v57  ;;  %v62_v3 = vld [vmem:[%s3359_s1 + $0x140] sm:$0xff] }
  0x10   :  { %1915 = vmatprep.subr.bf16.mxu1 %v1914_v44  ;;  %380 = vmatprep.mubr.f32.mxu0 %v2232_v7  ;;  %v81_v63 = vld [vmem:[%s3359_s1 + $0x1d8] sm:$0xff]  ;;  %v1922_v2 = vpack.c.bf16 %v79_v61, %v63_v60  ;;  %v78_v4 = vld [vmem:[%s3359_s1 + $0x1c0] sm:$0xff]  ;;  %v64_v5 = vld [vmem:[%s3359_s1 + $0x150] sm:$0xff] }
  0x11   :  { %451 = vmatprep.mubr.f32.mxu1 %v2232_v7  ;;  %v1930_v6 = vpack.c.bf16 %v81_v63, %v65_v62  ;;  %v80_v8 = vld [vmem:[%s3359_s1 + $0x1d0] sm:$0xff]  ;;  %v35_v9 = vld [vmem:[%s3359_s1 + $0x68] sm:$0xff]  ;;  %v37_v11 = vld [vmem:[%s3359_s1 + $0x78] sm:$0xff]  ;;  %v1924_v13 = vpack.c.bf16 %v78_v4, %v62_v3 }
  0x12   :  { %1909 = vmatpush1.bf16.msra.mxu0 %v1908_v51  ;;  %v51_v10 = vld [vmem:[%s3359_s1 + $0xe8] sm:$0xff]  ;;  %v53_v12 = vld [vmem:[%s3359_s1 + $0xf8] sm:$0xff]  ;;  %v1932_v14 = vpack.c.bf16 %v80_v8, %v64_v5  ;;  %v34_v16 = vld [vmem:[%s3359_s1 + $0x60] sm:$0xff] }
  0x13   :  { %1917 = vmatpush1.bf16.msra.mxu1 %v1916_v53  ;;  %1919 = vmatprep.subr.bf16.mxu0 %v1918_v54  ;;  %v1934_v15 = vpack.c.bf16 %v51_v10, %v35_v9  ;;  %v50_v17 = vld [vmem:[%s3359_s1 + $0xe0] sm:$0xff]  ;;  %v36_v18 = vld [vmem:[%s3359_s1 + $0x70] sm:$0xff]  ;;  %v1942_v19 = vpack.c.bf16 %v53_v12, %v37_v11  ;;  %v67_v21 = vld [vmem:[%s3359_s1 + $0x168] sm:$0xff] }
  0x14   :  { %1927 = vmatprep.subr.bf16.mxu1 %v1926_v58  ;;  %v52_v20 = vld [vmem:[%s3359_s1 + $0xf0] sm:$0xff]  ;;  %v83_v22 = vld [vmem:[%s3359_s1 + $0x1e8] sm:$0xff]  ;;  %v69_v23 = vld [vmem:[%s3359_s1 + $0x178] sm:$0xff]  ;;  %v1936_v25 = vpack.c.bf16 %v50_v17, %v34_v16 }
  0x15   :  { %1599 = vmatmul.mubr.msk.f32.vlgmr.msra.gmra.mrb[2].mxu0 %vm170_vm0, %v2320_v26  ;;  %v85_v24 = vld [vmem:[%s3359_s1 + $0x1f8] sm:$0xff]  ;;  %v1944_v27 = vpack.c.bf16 %v52_v20, %v36_v18  ;;  %v1938_v28 = vpack.c.bf16 %v83_v22, %v67_v21  ;;  %v66_v29 = vld [vmem:[%s3359_s1 + $0x160] sm:$0xff]  ;;  %v68_v31 = vld [vmem:[%s3359_s1 + $0x170] sm:$0xff] }
  0x16   :  { %1600 = vmatmul.mubr.msk.f32.vlgmr.msra.gmra.mrb[2].mxu1 %vm170_vm0, %v2320_v26  ;;  %1921 = vmatpush1.bf16.msra.mxu0 %v1920_v0  ;;  %v82_v30 = vld [vmem:[%s3359_s1 + $0x1e0] sm:$0xff]  ;;  %v1946_v32 = vpack.c.bf16 %v85_v24, %v69_v23  ;;  %v84_v33 = vld [vmem:[%s3359_s1 + $0x1f0] sm:$0xff]  ;;  %v775_v35 = vld [vmem:[%s3361_s3 + $0x88] sm:$0xff] }
  0x17   :  { %1929 = vmatpush1.bf16.msra.mxu1 %v1928_v1  ;;  %1923 = vmatprep.subr.bf16.mxu0 %v1922_v2  ;;  %v774_v34 = vld [vmem:[%s3361_s3 + $0x80] sm:$0xff]  ;;  %v807_v37 = vld [vmem:[%s3361_s3 + $0x188] sm:$0xff]  ;;  %v1940_v38 = vpack.c.bf16 %v82_v30, %v66_v29  ;;  %v1948_v39 = vpack.c.bf16 %v84_v33, %v68_v31  ;;  %v776_v46 = vld [vmem:[%s3361_s3 + $0x90] sm:$0xff] }
  0x18   :  { %1931 = vmatprep.subr.bf16.mxu1 %v1930_v6  ;;  %522 = vmatprep.mubr.f32.mxu0 %v2232_v7  ;;  %v806_v36 = vld [vmem:[%s3361_s3 + $0x180] sm:$0xff]  ;;  %v1950_v40 = vpack.c.bf16 %v775_v35, %v774_v34  ;;  %v759_v42 = vld [vmem:[%s3361_s3 + $0x8] sm:$0xff]  ;;  %v777_v47 = vld [vmem:[%s3361_s3 + $0x98] sm:$0xff] }
  0x19   :  { %593 = vmatprep.mubr.f32.mxu1 %v2232_v7  ;;  %v758_v41 = vld [vmem:[%s3361_s3] sm:$0xff]  ;;  %v1982_v44 = vpack.c.bf16 %v807_v37, %v806_v36  ;;  %v791_v45 = vld [vmem:[%s3361_s3 + $0x108] sm:$0xff]  ;;  %v808_v48 = vld [vmem:[%s3361_s3 + $0x190] sm:$0xff]  ;;  %v1954_v52 = vpack.c.bf16 %v777_v47, %v776_v46 }
  0x1a   :  { %1925 = vmatpush1.bf16.msra.mxu0 %v1924_v13  ;;  %v790_v43 = vld [vmem:[%s3361_s3 + $0x100] sm:$0xff]  ;;  %v809_v49 = vld [vmem:[%s3361_s3 + $0x198] sm:$0xff]  ;;  %v1952_v50 = vpack.c.bf16 %v759_v42, %v758_v41  ;;  %v760_v53 = vld [vmem:[%s3361_s3 + $0x10] sm:$0xff] }
  0x1b   :  { %1933 = vmatpush1.bf16.msra.mxu1 %v1932_v14  ;;  %1935 = vmatprep.subr.bf16.mxu0 %v1934_v15  ;;  %v1984_v51 = vpack.c.bf16 %v791_v45, %v790_v43  ;;  %v792_v54 = vld [vmem:[%s3361_s3 + $0x110] sm:$0xff]  ;;  %v1986_v55 = vpack.c.bf16 %v809_v49, %v808_v48  ;;  %v793_v56 = vld [vmem:[%s3361_s3 + $0x118] sm:$0xff]  ;;  %v778_v57 = vld [vmem:[%s3361_s3 + $0xa0] sm:$0xff] }
  0x1c   :  { %1943 = vmatprep.subr.bf16.mxu1 %v1942_v19  ;;  %v779_v58 = vld [vmem:[%s3361_s3 + $0xa8] sm:$0xff]  ;;  %v810_v59 = vld [vmem:[%s3361_s3 + $0x1a0] sm:$0xff]  ;;  %v1988_v62 = vpack.c.bf16 %v793_v56, %v792_v54  ;;  %v780_v4 = vld [vmem:[%s3361_s3 + $0xb0] sm:$0xff] }
  0x1d   :  { %1601 = vmatmul.mubr.msk.f32.vlgmr.msra.gmra.mrb[4].mxu0 %vm170_vm0, %v2320_v26  ;;  %v811_v60 = vld [vmem:[%s3361_s3 + $0x1a8] sm:$0xff]  ;;  %v1958_v63 = vpack.c.bf16 %v779_v58, %v778_v57  ;;  %v762_v0 = vld [vmem:[%s3361_s3 + $0x20] sm:$0xff]  ;;  %v781_v5 = vld [vmem:[%s3361_s3 + $0xb8] sm:$0xff] }
  0x1e   :  { %1602 = vmatmul.mubr.msk.f32.vlgmr.msra.gmra.mrb[4].mxu1 %vm170_vm0, %v2320_v26  ;;  %1937 = vmatpush1.bf16.msra.mxu0 %v1936_v25  ;;  %v763_v1 = vld [vmem:[%s3361_s3 + $0x28] sm:$0xff]  ;;  %v794_v2 = vld [vmem:[%s3361_s3 + $0x120] sm:$0xff]  ;;  %v812_v6 = vld [vmem:[%s3361_s3 + $0x1b0] sm:$0xff] }
  0x1f   :  { %1945 = vmatpush1.bf16.msra.mxu1 %v1944_v27  ;;  %1939 = vmatprep.subr.bf16.mxu0 %v1938_v28  ;;  %v795_v3 = vld [vmem:[%s3361_s3 + $0x128] sm:$0xff]  ;;  %v813_v8 = vld [vmem:[%s3361_s3 + $0x1b8] sm:$0xff]  ;;  %v1960_v9 = vpack.c.bf16 %v763_v1, %v762_v0 }
  0x20   :  { %1947 = vmatprep.subr.bf16.mxu1 %v1946_v32  ;;  %664 = vmatprep.mubr.f32.mxu0 %v2232_v7 }
  0x21   :  { %735 = vmatprep.mubr.f32.mxu1 %v2232_v7  ;;  %v761_v7 = vld [vmem:[%s3361_s3 + $0x18] sm:$0xff] }
  0x22   :  { %1941 = vmatpush1.bf16.msra.mxu0 %v1940_v38  ;;  %v1956_v61 = vpack.c.bf16 %v761_v7, %v760_v53 }
  0x23   :  { %1949 = vmatpush1.bf16.msra.mxu1 %v1948_v39  ;;  %1951 = vmatprep.subr.bf16.mxu0 %v1950_v40 }
  0x24   :  { %1983 = vmatprep.subr.bf16.mxu1 %v1982_v44 }
  0x25   :  { %1603 = vmatmul.mubr.msk.f32.vlgmr.msra.gmra.mrb[6].mxu0 %vm170_vm0, %v2320_v26 }
  0x26   :  { %1604 = vmatmul.mubr.msk.f32.vlgmr.msra.gmra.mrb[6].mxu1 %vm170_vm0, %v2320_v26  ;;  %1953 = vmatpush3.bf16.msra.mxu0 %v1952_v50  ;;  %v1990_v26 = vpack.c.bf16 %v811_v60, %v810_v59 }
  0x27   :  { %1985 = vmatpush3.bf16.msra.mxu1 %v1984_v51  ;;  %1955 = vmatprep.subr.bf16.mxu0 %v1954_v52 }
  0x28   :  { %1987 = vmatprep.subr.bf16.mxu1 %v1986_v55 }
  0x2a   :  { %1957 = vmatpush3.bf16.msra.mxu0 %v1956_v61 }
  0x2b   :  { %10 = vsyncpa [#allocation3], 0  ;;  %1989 = vmatpush3.bf16.msra.mxu1 %v1988_v62  ;;  %1959 = vmatprep.subr.bf16.mxu0 %v1958_v63  ;;  %v1992_v10 = vpack.c.bf16 %v795_v3, %v794_v2  ;;  %v1962_v11 = vpack.c.bf16 %v781_v5, %v780_v4  ;;  %v764_v12 = vld [vmem:[%s3361_s3 + $0x30] sm:$0xff]  ;;  %v765_v13 = vld [vmem:[%s3361_s3 + $0x38] sm:$0xff]  ;;  %v1994_v15 = vpack.c.bf16 %v813_v8, %v812_v6  ;;  %vm1581_vm1 = vcmask 64512  }
  0x2c   :  { %v796_v14 = vld [vmem:[%s3361_s3 + $0x130] sm:$0xff]  ;;  %1991 = vmatprep.subr.bf16.mxu1 %v1990_v26  ;;  %v797_v16 = vld [vmem:[%s3361_s3 + $0x138] sm:$0xff]  ;;  %v782_v17 = vld [vmem:[%s3361_s3 + $0xc0] sm:$0xff]  ;;  %v1964_v21 = vpack.c.bf16 %v765_v13, %v764_v12 }
  0x2d   :  { %v783_v18 = vld [vmem:[%s3361_s3 + $0xc8] sm:$0xff]  ;;  %v814_v19 = vld [vmem:[%s3361_s3 + $0x1c0] sm:$0xff]  ;;  %v1996_v22 = vpack.c.bf16 %v797_v16, %v796_v14  ;;  %v784_v30 = vld [vmem:[%s3361_s3 + $0xd0] sm:$0xff] }
  0x2e   :  { %v815_v20 = vld [vmem:[%s3361_s3 + $0x1c8] sm:$0xff]  ;;  %1961 = vmatpush3.bf16.msra.mxu0 %v1960_v9  ;;  %v1966_v23 = vpack.c.bf16 %v783_v18, %v782_v17  ;;  %v766_v24 = vld [vmem:[%s3361_s3 + $0x40] sm:$0xff]  ;;  %v785_v31 = vld [vmem:[%s3361_s3 + $0xd8] sm:$0xff]  ;;  %v90_v9 = vlaneseq }
  0x2f   :  { %1993 = vmatpush3.bf16.msra.mxu1 %v1992_v10  ;;  %1963 = vmatprep.subr.bf16.mxu0 %v1962_v11  ;;  %v767_v25 = vld [vmem:[%s3361_s3 + $0x48] sm:$0xff]  ;;  %v798_v27 = vld [vmem:[%s3361_s3 + $0x140] sm:$0xff]  ;;  %v1998_v28 = vpack.c.bf16 %v815_v20, %v814_v19  ;;  %v816_v32 = vld [vmem:[%s3361_s3 + $0x1d0] sm:$0xff]  ;;  %v1970_v36 = vpack.c.bf16 %v785_v31, %v784_v30 }
  0x30   :  { %1995 = vmatprep.subr.bf16.mxu1 %v1994_v15  ;;  %v799_v29 = vld [vmem:[%s3361_s3 + $0x148] sm:$0xff]  ;;  %v817_v33 = vld [vmem:[%s3361_s3 + $0x1d8] sm:$0xff]  ;;  %v1968_v34 = vpack.c.bf16 %v767_v25, %v766_v24  ;;  %v768_v37 = vld [vmem:[%s3361_s3 + $0x50] sm:$0xff]  ;;  %v2689_v10 = vshrl.u32 %v90_v9, 7 }
  0x31   :  { %v2000_v35 = vpack.c.bf16 %v799_v29, %v798_v27  ;;  %v769_v38 = vld [vmem:[%s3361_s3 + $0x58] sm:$0xff]  ;;  %v800_v39 = vld [vmem:[%s3361_s3 + $0x150] sm:$0xff]  ;;  %v2002_v40 = vpack.c.bf16 %v817_v33, %v816_v32  ;;  %v786_v42 = vld [vmem:[%s3361_s3 + $0xe0] sm:$0xff] }
  0x32   :  { %1965 = vmatpush3.bf16.msra.mxu0 %v1964_v21  ;;  %v801_v41 = vld [vmem:[%s3361_s3 + $0x158] sm:$0xff]  ;;  %v787_v43 = vld [vmem:[%s3361_s3 + $0xe8] sm:$0xff]  ;;  %v818_v44 = vld [vmem:[%s3361_s3 + $0x1e0] sm:$0xff]  ;;  %v1972_v46 = vpack.c.bf16 %v769_v38, %v768_v37  ;;  %v92_v11 = vsub.s32 0, %v2689_v10  ;;  %v100_v13 = vsub.s32 2, %v2689_v10  ;;  %v96_v14 = vsub.s32 1, %v2689_v10 }
  0x33   :  { %1997 = vmatpush3.bf16.msra.mxu1 %v1996_v22  ;;  %1967 = vmatprep.subr.bf16.mxu0 %v1966_v23  ;;  %v819_v45 = vld [vmem:[%s3361_s3 + $0x1e8] sm:$0xff]  ;;  %v2004_v47 = vpack.c.bf16 %v801_v41, %v800_v39  ;;  %v1974_v48 = vpack.c.bf16 %v787_v43, %v786_v42  ;;  %v770_v49 = vld [vmem:[%s3361_s3 + $0x60] sm:$0xff]  ;;  %v788_v55 = vld [vmem:[%s3361_s3 + $0xf0] sm:$0xff]  ;;  %v104_v15 = vsub.s32 3, %v2689_v10  ;;  %v120_v38 = vsub.s32 7, %v2689_v10 }
  0x34   :  { %1999 = vmatprep.subr.bf16.mxu1 %v1998_v28  ;;  %v771_v50 = vld [vmem:[%s3361_s3 + $0x68] sm:$0xff]  ;;  %v2006_v51 = vpack.c.bf16 %v819_v45, %v818_v44  ;;  %v802_v52 = vld [vmem:[%s3361_s3 + $0x160] sm:$0xff]  ;;  %v789_v56 = vld [vmem:[%s3361_s3 + $0xf8] sm:$0xff] }
  0x35   :  { %v803_v53 = vld [vmem:[%s3361_s3 + $0x168] sm:$0xff]  ;;  %v1976_v7 = vpack.c.bf16 %v771_v50, %v770_v49  ;;  %v820_v57 = vld [vmem:[%s3361_s3 + $0x1f0] sm:$0xff]  ;;  %v1978_v58 = vpack.c.bf16 %v789_v56, %v788_v55  ;;  %v821_v59 = vld [vmem:[%s3361_s3 + $0x1f8] sm:$0xff] }
  0x36   :  { %1969 = vmatpush3.bf16.msra.mxu0 %v1968_v34  ;;  %v2008_v54 = vpack.c.bf16 %v803_v53, %v802_v52  ;;  %v772_v60 = vld [vmem:[%s3361_s3 + $0x70] sm:$0xff]  ;;  %v773_v61 = vld [vmem:[%s3361_s3 + $0x78] sm:$0xff]  ;;  %v2010_v62 = vpack.c.bf16 %v821_v59, %v820_v57  ;;  %v838_v26 = vld [vmem:[%s3361_s3 + $0x280] sm:$0xff]  ;;  %v112_v34 = vsub.s32 5, %v2689_v10 }
  0x37   :  { %2001 = vmatpush3.bf16.msra.mxu1 %v2000_v35  ;;  %1971 = vmatprep.subr.bf16.mxu0 %v1970_v36  ;;  %v1980_v63 = vpack.c.bf16 %v773_v61, %v772_v60  ;;  %v804_v0 = vld [vmem:[%s3361_s3 + $0x170] sm:$0xff]  ;;  %v805_v1 = vld [vmem:[%s3361_s3 + $0x178] sm:$0xff]  ;;  %v839_v3 = vld [vmem:[%s3361_s3 + $0x288] sm:$0xff] }
  0x38   :  { %2003 = vmatprep.subr.bf16.mxu1 %v2002_v40  ;;  %v2012_v2 = vpack.c.bf16 %v805_v1, %v804_v0  ;;  %v870_v4 = vld [vmem:[%s3361_s3 + $0x380] sm:$0xff]  ;;  %v2014_v5 = vpack.c.bf16 %v839_v3, %v838_v26  ;;  %v871_v6 = vld [vmem:[%s3361_s3 + $0x388] sm:$0xff]  ;;  %v840_v32 = vld [vmem:[%s3361_s3 + $0x290] sm:$0xff] }
  0x39   :  { %v2046_v8 = vpack.c.bf16 %v871_v6, %v870_v4  ;;  %v2695_v12 = vld [vmem:[%s3360_s2] sm:$0xff]  ;;  %v823_v25 = vld [vmem:[%s3361_s3 + $0x208] sm:$0xff]  ;;  %v841_v33 = vld [vmem:[%s3361_s3 + $0x298] sm:$0xff] }
  0x3a   :  { %1973 = vmatpush3.bf16.msra.mxu0 %v1972_v46  ;;  %v93_v16 = vrot.slane %v2695_v12, %v92_v11  ;;  %v101_v17 = vrot.slane %v2695_v12, %v100_v13  ;;  %v97_v18 = vrot.slane %v2695_v12, %v96_v14  ;;  %v105_v19 = vrot.slane %v2695_v12, %v104_v15  ;;  %v822_v24 = vld [vmem:[%s3361_s3 + $0x200] sm:$0xff]  ;;  %v855_v31 = vld [vmem:[%s3361_s3 + $0x308] sm:$0xff]  ;;  %v872_v36 = vld [vmem:[%s3361_s3 + $0x390] sm:$0xff] }
  0x3b   :  { %2005 = vmatpush3.bf16.msra.mxu1 %v2004_v47  ;;  %1975 = vmatprep.subr.bf16.mxu0 %v1974_v48  ;;  %v854_v27 = vld [vmem:[%s3361_s3 + $0x300] sm:$0xff]  ;;  %v873_v37 = vld [vmem:[%s3361_s3 + $0x398] sm:$0xff]  ;;  %v2016_v41 = vpack.c.bf16 %v823_v25, %v822_v24  ;;  %v2018_v45 = vpack.c.bf16 %v841_v33, %v840_v32  ;;  %v824_v46 = vld [vmem:[%s3361_s3 + $0x210] sm:$0xff]  ;;  %v113_v53 = vrot.slane %v2695_v12, %v112_v34 }
  0x3c   :  { %2007 = vmatprep.subr.bf16.mxu1 %v2006_v51  ;;  %v2048_v44 = vpack.c.bf16 %v855_v31, %v854_v27  ;;  %v825_v47 = vld [vmem:[%s3361_s3 + $0x218] sm:$0xff]  ;;  %v856_v48 = vld [vmem:[%s3361_s3 + $0x310] sm:$0xff]  ;;  %v2050_v49 = vpack.c.bf16 %v873_v37, %v872_v36  ;;  %v842_v51 = vld [vmem:[%s3361_s3 + $0x2a0] sm:$0xff]  ;;  %v121_v55 = vrot.slane %v2695_v12, %v120_v38 }
  0x3d   :  { %v857_v50 = vld [vmem:[%s3361_s3 + $0x318] sm:$0xff]  ;;  %v843_v52 = vld [vmem:[%s3361_s3 + $0x2a8] sm:$0xff]  ;;  %v2020_v56 = vpack.c.bf16 %v825_v47, %v824_v46  ;;  %v826_v57 = vld [vmem:[%s3361_s3 + $0x220] sm:$0xff] }
  0x3e   :  { %1977 = vmatpush3.bf16.msra.mxu0 %v1976_v7  ;;  %v874_v7 = vld [vmem:[%s3361_s3 + $0x3a0] sm:$0xff]  ;;  %v2052_v59 = vpack.c.bf16 %v857_v50, %v856_v48  ;;  %v2022_v60 = vpack.c.bf16 %v843_v52, %v842_v51  ;;  %v827_v61 = vld [vmem:[%s3361_s3 + $0x228] sm:$0xff]  ;;  %v844_v26 = vld [vmem:[%s3361_s3 + $0x2b0] sm:$0xff]  ;;  %v108_v52 = vsub.s32 4, %v2689_v10 }
  0x3f   :  { %2009 = vmatpush3.bf16.msra.mxu1 %v2008_v54  ;;  %1979 = vmatprep.subr.bf16.mxu0 %v1978_v58  ;;  %v875_v54 = vld [vmem:[%s3361_s3 + $0x3a8] sm:$0xff]  ;;  %v845_v3 = vld [vmem:[%s3361_s3 + $0x2b8] sm:$0xff]  ;;  %v848_v46 = vld [vmem:[%s3361_s3 + $0x2d0] sm:$0xff] }
  0x40   :  { %2011 = vmatprep.subr.bf16.mxu1 %v2010_v62  ;;  %v858_v62 = vld [vmem:[%s3361_s3 + $0x320] sm:$0xff]  ;;  %v2793_v6 = vld [vmem:[%s3360_s2 + $0x8] sm:$0xff]  ;;  %v877_v9 = vld [vmem:[%s3361_s3 + $0x3b8] sm:$0xff] }
  0x41   :  { %v125_v25 = vrot.slane %v2793_v6, %v92_v11  ;;  %v133_v31 = vrot.slane %v2793_v6, %v100_v13  ;;  %v878_v11 = vld [vmem:[%s3361_s3 + $0x3c0] sm:$0xff]  ;;  %v879_v32 = vld [vmem:[%s3361_s3 + $0x3c8] sm:$0xff]  ;;  %v849_v47 = vld [vmem:[%s3361_s3 + $0x2d8] sm:$0xff] }
  0x42   :  { %1981 = vmatpush3.bf16.msra.mxu0 %v1980_v63  ;;  %v859_v63 = vld [vmem:[%s3361_s3 + $0x328] sm:$0xff]  ;;  %v830_v13 = vld [vmem:[%s3361_s3 + $0x240] sm:$0xff]  ;;  %v880_v50 = vld [vmem:[%s3361_s3 + $0x3d0] sm:$0xff] }
  0x43   :  { %2013 = vmatpush3.bf16.msra.mxu1 %v2012_v2  ;;  %2015 = vmatprep.subr.bf16.mxu0 %v2014_v5  ;;  %v2054_v2 = vpack.c.bf16 %v875_v54, %v874_v7  ;;  %v881_v51 = vld [vmem:[%s3361_s3 + $0x3d8] sm:$0xff]  ;;  %v116_v7 = vsub.s32 6, %v2689_v10  ;;  %v982_v10 = vld [vmem:[%s3361_s3 + $0x700] sm:$0xff] }
  0x44   :  { %2047 = vmatprep.subr.bf16.mxu1 %v2046_v8  ;;  %v876_v8 = vld [vmem:[%s3361_s3 + $0x3b0] sm:$0xff] }
  0x45   :  { %v2058_v27 = vpack.c.bf16 %v877_v9, %v876_v8 }
  0xe0   :  { %v240_v20 = vpop.f32.mrb[0].mxu0 }
  0xe1   :  { %v241_v21 = vadd.f32 %v240_v20, %v93_v16  ;;  %v311_v22 = vpop.f32.mrb[0].mxu1  ;;  %v242_v23 = vpop.f32.mrb[1].mxu0  ;;  %v2026_v20 = vpack.c.bf16 %v845_v3, %v844_v26  ;;  %v882_v26 = vld [vmem:[%s3361_s3 + $0x3e0] sm:$0xff]  ;;  %v883_v3 = vld [vmem:[%s3361_s3 + $0x3e8] sm:$0xff] }
  0xe2   :  { %v312_v28 = vadd.f32 %v311_v22, %v101_v17  ;;  %v243_v29 = vadd.f32 %v242_v23, %v97_v18  ;;  %v313_v30 = vpop.f32.mrb[1].mxu1  ;;  %v2024_v17 = vpack.c.bf16 %v827_v61, %v826_v57  ;;  %v829_v22 = vld [vmem:[%s3361_s3 + $0x238] sm:$0xff]  ;;  %v860_v23 = vld [vmem:[%s3361_s3 + $0x330] sm:$0xff]  ;;  %v2066_v61 = vpack.c.bf16 %v881_v51, %v880_v50 }
  0xe3   :  { %v314_v35 = vadd.f32 %v313_v30, %v105_v19  ;;  %v742_v42 = vmax.f32 %v241_v21, 0.0  ;;  %v2056_v19 = vpack.c.bf16 %v859_v63, %v858_v62  ;;  %v828_v21 = vld [vmem:[%s3361_s3 + $0x230] sm:$0xff]  ;;  %v847_v30 = vld [vmem:[%s3361_s3 + $0x2c8] sm:$0xff]  ;;  %v833_v57 = vld [vmem:[%s3361_s3 + $0x258] sm:$0xff]  ;;  %v137_v50 = vrot.slane %v2793_v6, %v104_v15 }
  0xe4   :  { %v744_v39 = vmax.f32 %v312_v28, 0.0  ;;  %v743_v40 = vmax.f32 %v243_v29, 0.0  ;;  %v861_v28 = vld [vmem:[%s3361_s3 + $0x338] sm:$0xff]  ;;  %v846_v29 = vld [vmem:[%s3361_s3 + $0x2c0] sm:$0xff]  ;;  %v2028_v33 = vpack.c.bf16 %v829_v22, %v828_v21  ;;  %v2070_v22 = vpack.c.bf16 %v883_v3, %v882_v26 }
  0xe5   :  { %v745_v43 = vmax.f32 %v314_v35, 0.0  ;;  %v2060_v36 = vpack.c.bf16 %v861_v28, %v860_v23  ;;  %v2030_v37 = vpack.c.bf16 %v847_v30, %v846_v29  ;;  %v865_v62 = vld [vmem:[%s3361_s3 + $0x358] sm:$0xff]  ;;  %v850_v63 = vld [vmem:[%s3361_s3 + $0x2e0] sm:$0xff]  ;;  %v867_v23 = vld [vmem:[%s3361_s3 + $0x368] sm:$0xff]  ;;  %v109_v29 = vrot.slane %v2695_v12, %v108_v52 }
  0xe6   :  { %1085 = vmatprep.mubr.f32.mxu0 %v743_v40  ;;  %v862_v40 = vld [vmem:[%s3361_s3 + $0x340] sm:$0xff]  ;;  %v884_v30 = vld [vmem:[%s3361_s3 + $0x3f0] sm:$0xff]  ;;  %v889_v3 = vld [vmem:[%s3361_s3 + $0x418] sm:$0xff] }
  0xe7   :  { %1155 = vmatprep.mubr.f32.mxu1 %v745_v43  ;;  %1086 = vmatmul.mubr.f32.vlgmr.msra.gmra.mrb[8].mxu0 %v742_v42  ;;  %v918_v15 = vld [vmem:[%s3361_s3 + $0x500] sm:$0xff] }
  0xe8   :  { %1156 = vmatmul.mubr.f32.vlgmr.msra.gmra.mrb[8].mxu1 %v744_v39  ;;  %2017 = vmatpush3.bf16.msra.mxu0 %v2016_v41  ;;  %v2771_v58 = vpop.f32.mrb[2].mxu0  ;;  %v831_v39 = vld [vmem:[%s3361_s3 + $0x248] sm:$0xff] }
  0xe9   :  { %2049 = vmatpush3.bf16.msra.mxu1 %v2048_v44  ;;  %2019 = vmatprep.subr.bf16.mxu0 %v2018_v45  ;;  %v2782_v0 = vpop.f32.mrb[2].mxu1  ;;  %v384_v1 = vpop.f32.mrb[3].mxu0  ;;  %v2062_v44 = vpack.c.bf16 %v879_v32, %v878_v11  ;;  %v863_v45 = vld [vmem:[%s3361_s3 + $0x348] sm:$0xff]  ;;  %v117_v11 = vrot.slane %v2695_v12, %v116_v7  ;;  %v869_v12 = vld [vmem:[%s3361_s3 + $0x378] sm:$0xff] }
  0xea   :  { %2051 = vmatprep.subr.bf16.mxu1 %v2050_v49  ;;  %v385_v4 = vadd.f32 %v384_v1, %v113_v53  ;;  %v455_v5 = vpop.f32.mrb[3].mxu1  ;;  %v2032_v53 = vpack.c.bf16 %v831_v39, %v830_v13  ;;  %v2064_v54 = vpack.c.bf16 %v863_v45, %v862_v40  ;;  %v851_v1 = vld [vmem:[%s3361_s3 + $0x2e8] sm:$0xff]  ;;  %v868_v13 = vld [vmem:[%s3361_s3 + $0x370] sm:$0xff]  ;;  %v902_v40 = vld [vmem:[%s3361_s3 + $0x480] sm:$0xff]  ;;  %v383_v45 = vadd.f32 %v2771_v58, %v109_v29 }
  0xeb   :  { %v456_v16 = vadd.f32 %v455_v5, %v121_v55  ;;  %v2034_v55 = vpack.c.bf16 %v849_v47, %v848_v46  ;;  %v2038_v9 = vpack.c.bf16 %v851_v1, %v850_v63  ;;  %v934_v46 = vld [vmem:[%s3361_s3 + $0x580] sm:$0xff]  ;;  %v935_v47 = vld [vmem:[%s3361_s3 + $0x588] sm:$0xff]  ;;  %v454_v51 = vadd.f32 %v2782_v0, %v117_v11 }
  0xec   :  { %2021 = vmatpush3.bf16.msra.mxu0 %v2020_v56  ;;  %v747_v18 = vmax.f32 %v385_v4, 0.0  ;;  %v832_v56 = vld [vmem:[%s3361_s3 + $0x250] sm:$0xff]  ;;  %v2110_v0 = vpack.c.bf16 %v935_v47, %v934_v46  ;;  %v891_v29 = vld [vmem:[%s3361_s3 + $0x428] sm:$0xff]  ;;  %v910_v46 = vld [vmem:[%s3361_s3 + $0x4c0] sm:$0xff] }
  0xed   :  { %2053 = vmatpush3.bf16.msra.mxu1 %v2052_v59  ;;  %2023 = vmatprep.subr.bf16.mxu0 %v2022_v60  ;;  %v749_v24 = vmax.f32 %v456_v16, 0.0  ;;  %v864_v59 = vld [vmem:[%s3361_s3 + $0x350] sm:$0xff]  ;;  %v141_v60 = vrot.slane %v2793_v6, %v108_v52  ;;  %v2036_v4 = vpack.c.bf16 %v833_v57, %v832_v56  ;;  %v834_v16 = vld [vmem:[%s3361_s3 + $0x260] sm:$0xff]  ;;  %v905_v56 = vld [vmem:[%s3361_s3 + $0x498] sm:$0xff]  ;;  %v748_v63 = vmax.f32 %v454_v51, 0.0 }
  0xee   :  { %2055 = vmatprep.subr.bf16.mxu1 %v2054_v2  ;;  %1225 = vmatprep.mubr.f32.mxu0 %v747_v18  ;;  %v149_v2 = vrot.slane %v2793_v6, %v116_v7  ;;  %v2068_v8 = vpack.c.bf16 %v865_v62, %v864_v59  ;;  %v866_v18 = vld [vmem:[%s3361_s3 + $0x360] sm:$0xff]  ;;  %v887_v7 = vld [vmem:[%s3361_s3 + $0x408] sm:$0xff]  ;;  %v746_v59 = vmax.f32 %v383_v45, 0.0  ;;  %v925_v45 = vld [vmem:[%s3361_s3 + $0x538] sm:$0xff] }
  0xef   :  { %1295 = vmatprep.mubr.f32.mxu1 %v749_v24  ;;  %v852_v24 = vld [vmem:[%s3361_s3 + $0x2f0] sm:$0xff]  ;;  %v923_v11 = vld [vmem:[%s3361_s3 + $0x528] sm:$0xff] }
  0xf0   :  { %2025 = vmatpush3.bf16.msra.mxu0 %v2024_v17  ;;  %v524_v35 = vpop.f32.mrb[4].mxu0  ;;  %v835_v17 = vld [vmem:[%s3361_s3 + $0x268] sm:$0xff] }
  0xf1   :  { %2057 = vmatpush3.bf16.msra.mxu1 %v2056_v19  ;;  %2027 = vmatprep.subr.bf16.mxu0 %v2026_v20  ;;  %v2840_v41 = vadd.f32 %v524_v35, %v125_v25  ;;  %v595_v42 = vpop.f32.mrb[4].mxu1  ;;  %v2842_v43 = vpop.f32.mrb[5].mxu0  ;;  %v853_v25 = vld [vmem:[%s3361_s3 + $0x2f8] sm:$0xff]  ;;  %v2040_v32 = vpack.c.bf16 %v835_v17, %v834_v16  ;;  %v938_v17 = vld [vmem:[%s3361_s3 + $0x5a0] sm:$0xff]  ;;  %v911_v47 = vld [vmem:[%s3361_s3 + $0x4c8] sm:$0xff] }
  0xf2   :  { %2059 = vmatprep.subr.bf16.mxu1 %v2058_v27  ;;  %v2853_v48 = vadd.f32 %v595_v42, %v133_v31  ;;  %v2855_v49 = vpop.f32.mrb[5].mxu1  ;;  %v885_v31 = vld [vmem:[%s3361_s3 + $0x3f8] sm:$0xff]  ;;  %v2042_v35 = vpack.c.bf16 %v853_v25, %v852_v24  ;;  %v903_v42 = vld [vmem:[%s3361_s3 + $0x488] sm:$0xff]  ;;  %v890_v25 = vld [vmem:[%s3361_s3 + $0x420] sm:$0xff] }
  0xf3   :  { %v2074_v39 = vpack.c.bf16 %v885_v31, %v884_v30  ;;  %v2078_v58 = vpack.c.bf16 %v903_v42, %v902_v40  ;;  %v598_v62 = vadd.f32 %v2855_v49, %v137_v50  ;;  %v922_v30 = vld [vmem:[%s3361_s3 + $0x520] sm:$0xff]  ;;  %v893_v40 = vld [vmem:[%s3361_s3 + $0x438] sm:$0xff]  ;;  %v924_v42 = vld [vmem:[%s3361_s3 + $0x530] sm:$0xff] }
  0xf4   :  { %2029 = vmatpush3.bf16.msra.mxu0 %v2028_v33  ;;  %v2072_v33 = vpack.c.bf16 %v867_v23, %v866_v18  ;;  %v939_v18 = vld [vmem:[%s3361_s3 + $0x5a8] sm:$0xff]  ;;  %v942_v50 = vld [vmem:[%s3361_s3 + $0x5c0] sm:$0xff] }
  0xf5   :  { %2061 = vmatpush3.bf16.msra.mxu1 %v2060_v36  ;;  %2031 = vmatprep.subr.bf16.mxu0 %v2030_v37  ;;  %v836_v36 = vld [vmem:[%s3361_s3 + $0x270] sm:$0xff]  ;;  %v837_v37 = vld [vmem:[%s3361_s3 + $0x278] sm:$0xff]  ;;  %v2118_v31 = vpack.c.bf16 %v939_v18, %v938_v17  ;;  %v943_v51 = vld [vmem:[%s3361_s3 + $0x5c8] sm:$0xff] }
  0xf6   :  { %2063 = vmatprep.subr.bf16.mxu1 %v2062_v44  ;;  %v129_v44 = vrot.slane %v2793_v6, %v96_v14  ;;  %v2044_v52 = vpack.c.bf16 %v837_v37, %v836_v36  ;;  %v2076_v14 = vpack.c.bf16 %v869_v12, %v868_v13  ;;  %v941_v36 = vld [vmem:[%s3361_s3 + $0x5b8] sm:$0xff]  ;;  %v2088_v37 = vpack.c.bf16 %v891_v29, %v890_v25  ;;  %v892_v12 = vld [vmem:[%s3361_s3 + $0x430] sm:$0xff]  ;;  %v898_v17 = vld [vmem:[%s3361_s3 + $0x460] sm:$0xff] }
  0xf7   :  { %v2120_v13 = vpack.c.bf16 %v923_v11, %v922_v30  ;;  %v899_v18 = vld [vmem:[%s3361_s3 + $0x468] sm:$0xff]  ;;  %v917_v25 = vld [vmem:[%s3361_s3 + $0x4f8] sm:$0xff]  ;;  %v948_v29 = vld [vmem:[%s3361_s3 + $0x5f0] sm:$0xff] }
  0xf8   :  { %2033 = vmatpush3.bf16.msra.mxu0 %v2032_v53  ;;  %v666_v5 = vpop.f32.mrb[6].mxu0  ;;  %v886_v53 = vld [vmem:[%s3361_s3 + $0x400] sm:$0xff]  ;;  %v527_v57 = vadd.f32 %v2842_v43, %v129_v44  ;;  %v888_v43 = vld [vmem:[%s3361_s3 + $0x410] sm:$0xff]  ;;  %v949_v30 = vld [vmem:[%s3361_s3 + $0x5f8] sm:$0xff] }
  0xf9   :  { %2065 = vmatpush3.bf16.msra.mxu1 %v2064_v54  ;;  %2035 = vmatprep.subr.bf16.mxu0 %v2034_v55  ;;  %v2900_v19 = vadd.f32 %v666_v5, %v141_v60  ;;  %v2902_v20 = vpop.f32.mrb[7].mxu0  ;;  %v737_v21 = vpop.f32.mrb[6].mxu1  ;;  %v919_v54 = vld [vmem:[%s3361_s3 + $0x508] sm:$0xff]  ;;  %v904_v55 = vld [vmem:[%s3361_s3 + $0x490] sm:$0xff]  ;;  %v2080_v1 = vpack.c.bf16 %v887_v7, %v886_v53  ;;  %v921_v5 = vld [vmem:[%s3361_s3 + $0x518] sm:$0xff] }
  0xfa   :  { %2067 = vmatprep.subr.bf16.mxu1 %v2066_v61  ;;  %v2913_v27 = vadd.f32 %v737_v21, %v149_v2  ;;  %v2915_v28 = vpop.f32.mrb[7].mxu1  ;;  %v936_v60 = vld [vmem:[%s3361_s3 + $0x590] sm:$0xff]  ;;  %v937_v61 = vld [vmem:[%s3361_s3 + $0x598] sm:$0xff]  ;;  %v2112_v2 = vpack.c.bf16 %v919_v54, %v918_v15  ;;  %v2082_v26 = vpack.c.bf16 %v905_v56, %v904_v55  ;;  %v751_v16 = vmax.f32 %v527_v57, 0.0  ;;  %v894_v53 = vld [vmem:[%s3361_s3 + $0x440] sm:$0xff] }
  0xfb   :  { %v2114_v49 = vpack.c.bf16 %v937_v61, %v936_v60  ;;  %v753_v21 = vmax.f32 %v598_v62, 0.0  ;;  %v895_v7 = vld [vmem:[%s3361_s3 + $0x448] sm:$0xff]  ;;  %v926_v15 = vld [vmem:[%s3361_s3 + $0x540] sm:$0xff]  ;;  %v912_v55 = vld [vmem:[%s3361_s3 + $0x4d0] sm:$0xff] }
  0xfc   :  { %2037 = vmatpush3.bf16.msra.mxu0 %v2036_v4  ;;  %v920_v4 = vld [vmem:[%s3361_s3 + $0x510] sm:$0xff]  ;;  %v927_v54 = vld [vmem:[%s3361_s3 + $0x548] sm:$0xff]  ;;  %v913_v56 = vld [vmem:[%s3361_s3 + $0x4d8] sm:$0xff]  ;;  %v2096_v60 = vpack.c.bf16 %v895_v7, %v894_v53  ;;  %v750_v53 = vmax.f32 %v2840_v41, 0.0 }
  0xfd   :  { %2069 = vmatpush3.bf16.msra.mxu1 %v2068_v8  ;;  %2039 = vmatprep.subr.bf16.mxu0 %v2038_v9  ;;  %v906_v8 = vld [vmem:[%s3361_s3 + $0x4a0] sm:$0xff]  ;;  %v907_v9 = vld [vmem:[%s3361_s3 + $0x4a8] sm:$0xff]  ;;  %v2116_v23 = vpack.c.bf16 %v921_v5, %v920_v4  ;;  %v944_v57 = vld [vmem:[%s3361_s3 + $0x5d0] sm:$0xff]  ;;  %v2128_v61 = vpack.c.bf16 %v927_v54, %v926_v15  ;;  %v2098_v62 = vpack.c.bf16 %v913_v56, %v912_v55  ;;  %v752_v54 = vmax.f32 %v2853_v48, 0.0 }
  0xfe   :  { %2071 = vmatprep.subr.bf16.mxu1 %v2070_v22  ;;  %v2084_v22 = vpack.c.bf16 %v889_v3, %v888_v43  ;;  %v2086_v24 = vpack.c.bf16 %v907_v9, %v906_v8  ;;  %v929_v43 = vld [vmem:[%s3361_s3 + $0x558] sm:$0xff]  ;;  %v914_v3 = vld [vmem:[%s3361_s3 + $0x4e0] sm:$0xff]  ;;  %v915_v4 = vld [vmem:[%s3361_s3 + $0x4e8] sm:$0xff] }
  0xff   :  { %v947_v5 = vld [vmem:[%s3361_s3 + $0x5e8] sm:$0xff]  ;;  %v1000_v7 = vld [vmem:[%s3361_s3 + $0x790] sm:$0xff]  ;;  %v1001_v15 = vld [vmem:[%s3361_s3 + $0x798] sm:$0xff] }
 0x100   :  { %2041 = vmatpush3.bf16.msra.mxu0 %v2040_v32  ;;  %v908_v32 = vld [vmem:[%s3361_s3 + $0x4b0] sm:$0xff]  ;;  %v2178_v48 = vpack.c.bf16 %v1001_v15, %v1000_v7  ;;  %v978_v7 = vld [vmem:[%s3361_s3 + $0x6e0] sm:$0xff]  ;;  %v979_v15 = vld [vmem:[%s3361_s3 + $0x6e8] sm:$0xff] }
 0x101   :  { %2073 = vmatpush3.bf16.msra.mxu1 %v2072_v33  ;;  %2043 = vmatprep.subr.bf16.mxu0 %v2042_v35  ;;  %v909_v33 = vld [vmem:[%s3361_s3 + $0x4b8] sm:$0xff]  ;;  %v940_v35 = vld [vmem:[%s3361_s3 + $0x5b0] sm:$0xff] }
 0x102   :  { %2075 = vmatprep.subr.bf16.mxu1 %v2074_v39  ;;  %v2090_v39 = vpack.c.bf16 %v909_v33, %v908_v32  ;;  %v2122_v44 = vpack.c.bf16 %v941_v36, %v940_v35  ;;  %v900_v33 = vld [vmem:[%s3361_s3 + $0x470] sm:$0xff]  ;;  %v901_v35 = vld [vmem:[%s3361_s3 + $0x478] sm:$0xff] }
 0x103   :  { %v932_v36 = vld [vmem:[%s3361_s3 + $0x570] sm:$0xff] }
 0x104   :  { %2045 = vmatpush3.bf16.msra.mxu0 %v2044_v52  ;;  %v2092_v52 = vpack.c.bf16 %v893_v40, %v892_v12  ;;  %v967_v12 = vld [vmem:[%s3361_s3 + $0x688] sm:$0xff]  ;;  %v145_v40 = vrot.slane %v2793_v6, %v112_v34  ;;  %v950_v34 = vld [vmem:[%s3361_s3 + $0x600] sm:$0xff]  ;;  %v952_v41 = vld [vmem:[%s3361_s3 + $0x610] sm:$0xff] }
 0x105   :  { %2077 = vmatpush3.bf16.msra.mxu1 %v2076_v14  ;;  %2079 = vmatprep.subr.bf16.mxu0 %v2078_v58  ;;  %v2124_v14 = vpack.c.bf16 %v925_v45, %v924_v42  ;;  %v2094_v58 = vpack.c.bf16 %v911_v47, %v910_v46  ;;  %v998_v42 = vld [vmem:[%s3361_s3 + $0x780] sm:$0xff]  ;;  %v153_v45 = vrot.slane %v2793_v6, %v120_v38  ;;  %v983_v6 = vld [vmem:[%s3361_s3 + $0x708] sm:$0xff] }
 0x106   :  { %2111 = vmatprep.subr.bf16.mxu1 %v2110_v0  ;;  %v2126_v0 = vpack.c.bf16 %v943_v51, %v942_v50  ;;  %v2108_v46 = vpack.c.bf16 %v901_v35, %v900_v33  ;;  %v951_v51 = vld [vmem:[%s3361_s3 + $0x608] sm:$0xff]  ;;  %v2176_v56 = vpack.c.bf16 %v983_v6, %v982_v10  ;;  %v1006_v35 = vld [vmem:[%s3361_s3 + $0x7c0] sm:$0xff]  ;;  %v960_v6 = vld [vmem:[%s3361_s3 + $0x650] sm:$0xff] }
 0x107   :  { %1226 = vmatmul.mubr.f32.vlgmr.msra.gmra.mrb[10].mxu0 %v746_v59  ;;  %v945_v59 = vld [vmem:[%s3361_s3 + $0x5d8] sm:$0xff]  ;;  %v2144_v55 = vpack.c.bf16 %v951_v51, %v950_v34  ;;  %v975_v33 = vld [vmem:[%s3361_s3 + $0x6c8] sm:$0xff] }
 0x108   :  { %1296 = vmatmul.mubr.f32.vlgmr.msra.gmra.mrb[10].mxu1 %v748_v63  ;;  %2081 = vmatpush3.bf16.msra.mxu0 %v2080_v1  ;;  %v896_v63 = vld [vmem:[%s3361_s3 + $0x450] sm:$0xff]  ;;  %v897_v1 = vld [vmem:[%s3361_s3 + $0x458] sm:$0xff] }
 0x109   :  { %2113 = vmatpush3.bf16.msra.mxu1 %v2112_v2  ;;  %2083 = vmatprep.subr.bf16.mxu0 %v2082_v26  ;;  %v928_v2 = vld [vmem:[%s3361_s3 + $0x550] sm:$0xff]  ;;  %v2130_v26 = vpack.c.bf16 %v945_v59, %v944_v57  ;;  %v2100_v8 = vpack.c.bf16 %v897_v1, %v896_v63  ;;  %v953_v57 = vld [vmem:[%s3361_s3 + $0x618] sm:$0xff]  ;;  %v1002_v63 = vld [vmem:[%s3361_s3 + $0x7a0] sm:$0xff] }
 0x10a   :  { %2115 = vmatprep.subr.bf16.mxu1 %v2114_v49  ;;  %1365 = vmatprep.mubr.f32.mxu0 %v751_v16  ;;  %v946_v49 = vld [vmem:[%s3361_s3 + $0x5e0] sm:$0xff]  ;;  %v2132_v9 = vpack.c.bf16 %v929_v43, %v928_v2  ;;  %v2102_v16 = vpack.c.bf16 %v915_v4, %v914_v3  ;;  %v985_v59 = vld [vmem:[%s3361_s3 + $0x718] sm:$0xff]  ;;  %v1003_v1 = vld [vmem:[%s3361_s3 + $0x7a8] sm:$0xff] }
 0x10b   :  { %1435 = vmatprep.mubr.f32.mxu1 %v753_v21  ;;  %v930_v21 = vld [vmem:[%s3361_s3 + $0x560] sm:$0xff]  ;;  %v1009_v34 = vld [vmem:[%s3361_s3 + $0x7d8] sm:$0xff] }
 0x10c   :  { %2085 = vmatpush3.bf16.msra.mxu0 %v2084_v22  ;;  %v2134_v22 = vpack.c.bf16 %v947_v5, %v946_v49  ;;  %v954_v4 = vld [vmem:[%s3361_s3 + $0x620] sm:$0xff]  ;;  %v955_v49 = vld [vmem:[%s3361_s3 + $0x628] sm:$0xff] }
 0x10d   :  { %2117 = vmatpush3.bf16.msra.mxu1 %v2116_v23  ;;  %2087 = vmatprep.subr.bf16.mxu0 %v2086_v24  ;;  %v931_v23 = vld [vmem:[%s3361_s3 + $0x568] sm:$0xff]  ;;  %v916_v24 = vld [vmem:[%s3361_s3 + $0x4f0] sm:$0xff]  ;;  %v986_v5 = vld [vmem:[%s3361_s3 + $0x720] sm:$0xff] }
 0x10e   :  { %2119 = vmatprep.subr.bf16.mxu1 %v2118_v31  ;;  %v2104_v31 = vpack.c.bf16 %v899_v18, %v898_v17  ;;  %v2136_v11 = vpack.c.bf16 %v931_v23, %v930_v21  ;;  %v2106_v32 = vpack.c.bf16 %v917_v25, %v916_v24  ;;  %v973_v17 = vld [vmem:[%s3361_s3 + $0x6b8] sm:$0xff]  ;;  %v1004_v18 = vld [vmem:[%s3361_s3 + $0x7b0] sm:$0xff] }
 0x10f   :  { %v1005_v21 = vld [vmem:[%s3361_s3 + $0x7b8] sm:$0xff]  ;;  %v956_v25 = vld [vmem:[%s3361_s3 + $0x630] sm:$0xff] }
 0x110   :  { %2089 = vmatpush3.bf16.msra.mxu0 %v2088_v37  ;;  %v2138_v37 = vpack.c.bf16 %v949_v30, %v948_v29  ;;  %v957_v29 = vld [vmem:[%s3361_s3 + $0x638] sm:$0xff]  ;;  %v988_v30 = vld [vmem:[%s3361_s3 + $0x730] sm:$0xff] }
 0x111   :  { %2121 = vmatpush3.bf16.msra.mxu1 %v2120_v13  ;;  %2091 = vmatprep.subr.bf16.mxu0 %v2090_v39  ;;  %v933_v13 = vld [vmem:[%s3361_s3 + $0x578] sm:$0xff]  ;;  %v966_v39 = vld [vmem:[%s3361_s3 + $0x680] sm:$0xff] }
 0x112   :  { %2123 = vmatprep.subr.bf16.mxu1 %v2122_v44  ;;  %v999_v44 = vld [vmem:[%s3361_s3 + $0x788] sm:$0xff]  ;;  %v2140_v47 = vpack.c.bf16 %v933_v13, %v932_v36  ;;  %v2142_v50 = vpack.c.bf16 %v967_v12, %v966_v39  ;;  %v958_v12 = vld [vmem:[%s3361_s3 + $0x640] sm:$0xff] }
 0x113   :  { %v2174_v38 = vpack.c.bf16 %v999_v44, %v998_v42  ;;  %v1007_v36 = vld [vmem:[%s3361_s3 + $0x7c8] sm:$0xff]  ;;  %v990_v42 = vld [vmem:[%s3361_s3 + $0x740] sm:$0xff] }
 0x114   :  { %2093 = vmatpush3.bf16.msra.mxu0 %v2092_v52  ;;  %v968_v52 = vld [vmem:[%s3361_s3 + $0x690] sm:$0xff]  ;;  %v2190_v44 = vpack.c.bf16 %v1007_v36, %v1006_v35 }
 0x115   :  { %2125 = vmatpush3.bf16.msra.mxu1 %v2124_v14  ;;  %2095 = vmatprep.subr.bf16.mxu0 %v2094_v58  ;;  %v969_v14 = vld [vmem:[%s3361_s3 + $0x698] sm:$0xff]  ;;  %v669_v58 = vadd.f32 %v2902_v20, %v145_v40  ;;  %v959_v40 = vld [vmem:[%s3361_s3 + $0x648] sm:$0xff] }
 0x116   :  { %2127 = vmatprep.subr.bf16.mxu1 %v2126_v0  ;;  %v740_v0 = vadd.f32 %v2915_v28, %v153_v45  ;;  %v2146_v20 = vpack.c.bf16 %v969_v14, %v968_v52  ;;  %v984_v28 = vld [vmem:[%s3361_s3 + $0x710] sm:$0xff]  ;;  %v991_v45 = vld [vmem:[%s3361_s3 + $0x748] sm:$0xff]  ;;  %v2160_v51 = vpack.c.bf16 %v959_v40, %v958_v12  ;;  %v961_v52 = vld [vmem:[%s3361_s3 + $0x658] sm:$0xff] }
 0x117   :  { %v2180_v43 = vpack.c.bf16 %v985_v59, %v984_v28  ;;  %v2192_v10 = vpack.c.bf16 %v991_v45, %v990_v42  ;;  %v992_v14 = vld [vmem:[%s3361_s3 + $0x750] sm:$0xff]  ;;  %v994_v28 = vld [vmem:[%s3361_s3 + $0x760] sm:$0xff]  ;;  %v995_v59 = vld [vmem:[%s3361_s3 + $0x768] sm:$0xff] }
 0x118   :  { %2097 = vmatpush3.bf16.msra.mxu0 %v2096_v60  ;;  %v970_v60 = vld [vmem:[%s3361_s3 + $0x6a0] sm:$0xff]  ;;  %v757_v2 = vmax.f32 %v740_v0, 0.0 }
 0x119   :  { %2129 = vmatpush3.bf16.msra.mxu1 %v2128_v61  ;;  %2099 = vmatprep.subr.bf16.mxu0 %v2098_v62  ;;  %v971_v61 = vld [vmem:[%s3361_s3 + $0x6a8] sm:$0xff]  ;;  %v755_v62 = vmax.f32 %v669_v58, 0.0  ;;  %v1010_v0 = vld [vmem:[%s3361_s3 + $0x7e0] sm:$0xff] }
 0x11a   :  { %2131 = vmatprep.subr.bf16.mxu1 %v2130_v26  ;;  %v2148_v26 = vpack.c.bf16 %v953_v57, %v952_v41  ;;  %v2150_v3 = vpack.c.bf16 %v971_v61, %v970_v60  ;;  %v962_v41 = vld [vmem:[%s3361_s3 + $0x660] sm:$0xff]  ;;  %v963_v57 = vld [vmem:[%s3361_s3 + $0x668] sm:$0xff]  ;;  %v980_v60 = vld [vmem:[%s3361_s3 + $0x6f0] sm:$0xff] }
 0x11b   :  { %v981_v61 = vld [vmem:[%s3361_s3 + $0x6f8] sm:$0xff] }
 0x11c   :  { %2101 = vmatpush3.bf16.msra.mxu0 %v2100_v8  ;;  %v2182_v8 = vpack.c.bf16 %v1003_v1, %v1002_v63  ;;  %v1013_v63 = vld [vmem:[%s3361_s3 + $0x7f8] sm:$0xff]  ;;  %v2168_v1 = vpack.c.bf16 %v963_v57, %v962_v41 }
 0x11d   :  { %2133 = vmatpush3.bf16.msra.mxu1 %v2132_v9  ;;  %2103 = vmatprep.subr.bf16.mxu0 %v2102_v16  ;;  %v987_v9 = vld [vmem:[%s3361_s3 + $0x728] sm:$0xff]  ;;  %v972_v16 = vld [vmem:[%s3361_s3 + $0x6b0] sm:$0xff] }
 0x11e   :  { %2135 = vmatprep.subr.bf16.mxu1 %v2134_v22  ;;  %v2152_v22 = vpack.c.bf16 %v955_v49, %v954_v4  ;;  %v2184_v23 = vpack.c.bf16 %v987_v9, %v986_v5  ;;  %v2154_v24 = vpack.c.bf16 %v973_v17, %v972_v16  ;;  %v996_v49 = vld [vmem:[%s3361_s3 + $0x770] sm:$0xff]  ;;  %v997_v5 = vld [vmem:[%s3361_s3 + $0x778] sm:$0xff]  ;;  %v756_v16 = vmax.f32 %v2913_v27, 0.0 }
 0x11f   :  { %v2204_v9 = vpack.c.bf16 %v997_v5, %v996_v49  ;;  %v754_v17 = vmax.f32 %v2900_v19, 0.0 }
 0x120   :  { %2105 = vmatpush3.bf16.msra.mxu0 %v2104_v31  ;;  %v2186_v31 = vpack.c.bf16 %v1005_v21, %v1004_v18 }
 0x121   :  { %2137 = vmatpush3.bf16.msra.mxu1 %v2136_v11  ;;  %2107 = vmatprep.subr.bf16.mxu0 %v2106_v32  ;;  %v989_v11 = vld [vmem:[%s3361_s3 + $0x738] sm:$0xff]  ;;  %v974_v32 = vld [vmem:[%s3361_s3 + $0x6c0] sm:$0xff] }
 0x122   :  { %2139 = vmatprep.subr.bf16.mxu1 %v2138_v37  ;;  %v2156_v37 = vpack.c.bf16 %v957_v29, %v956_v25  ;;  %v2188_v13 = vpack.c.bf16 %v989_v11, %v988_v30  ;;  %v2158_v39 = vpack.c.bf16 %v975_v33, %v974_v32 }
 0x124   :  { %2109 = vmatpush3.bf16.msra.mxu0 %v2108_v46  ;;  %v976_v46 = vld [vmem:[%s3361_s3 + $0x6d0] sm:$0xff] }
 0x125   :  { %2141 = vmatpush3.bf16.msra.mxu1 %v2140_v47  ;;  %2143 = vmatprep.subr.bf16.mxu0 %v2142_v50  ;;  %v977_v47 = vld [vmem:[%s3361_s3 + $0x6d8] sm:$0xff]  ;;  %v1008_v50 = vld [vmem:[%s3361_s3 + $0x7d0] sm:$0xff] }
 0x126   :  { %2175 = vmatprep.subr.bf16.mxu1 %v2174_v38  ;;  %v2162_v38 = vpack.c.bf16 %v977_v47, %v976_v46  ;;  %v2194_v58 = vpack.c.bf16 %v1009_v34, %v1008_v50 }
 0x127   :  { %1366 = vmatmul.mubr.f32.vlgmr.msra.gmra.mrb[12].mxu0 %v750_v53  ;;  %v993_v53 = vld [vmem:[%s3361_s3 + $0x758] sm:$0xff] }
 0x128   :  { %1436 = vmatmul.mubr.f32.vlgmr.msra.gmra.mrb[12].mxu1 %v752_v54  ;;  %2145 = vmatpush3.bf16.msra.mxu0 %v2144_v55  ;;  %v1011_v54 = vld [vmem:[%s3361_s3 + $0x7e8] sm:$0xff]  ;;  %v2164_v55 = vpack.c.bf16 %v961_v52, %v960_v6 }
 0x129   :  { %2177 = vmatpush3.bf16.msra.mxu1 %v2176_v56  ;;  %2147 = vmatprep.subr.bf16.mxu0 %v2146_v20  ;;  %v2196_v56 = vpack.c.bf16 %v993_v53, %v992_v14  ;;  %v2166_v20 = vpack.c.bf16 %v979_v15, %v978_v7 }
 0x12a   :  { %2179 = vmatprep.subr.bf16.mxu1 %v2178_v48  ;;  %1505 = vmatprep.mubr.f32.mxu0 %v755_v62  ;;  %v2198_v48 = vpack.c.bf16 %v1011_v54, %v1010_v0  ;;  %v1012_v62 = vld [vmem:[%s3361_s3 + $0x7f0] sm:$0xff] }
 0x12b   :  { %1575 = vmatprep.mubr.f32.mxu1 %v757_v2  ;;  %v2200_v2 = vpack.c.bf16 %v995_v59, %v994_v28  ;;  %v2202_v4 = vpack.c.bf16 %v1013_v63, %v1012_v62 }
 0x12c   :  { %2149 = vmatpush3.bf16.msra.mxu0 %v2148_v26  ;;  %v2170_v26 = vpack.c.bf16 %v981_v61, %v980_v60 }
 0x12d   :  { %2181 = vmatpush3.bf16.msra.mxu1 %v2180_v43  ;;  %2151 = vmatprep.subr.bf16.mxu0 %v2150_v3  ;;  %v964_v43 = vld [vmem:[%s3361_s3 + $0x670] sm:$0xff]  ;;  %v965_v3 = vld [vmem:[%s3361_s3 + $0x678] sm:$0xff]  ;;  %s2233_s3 = smov [#allocation2]  }
 0x12e   :  { %2183 = vmatprep.subr.bf16.mxu1 %v2182_v8  ;;  %v2172_v8 = vpack.c.bf16 %v965_v3, %v964_v43 }
 0x130   :  { %2153 = vmatpush3.bf16.msra.mxu0 %v2152_v22  ;;  %v1605_v22 = vld [vmem:[%s3362_s4] ss:$0 sm:$0xff]  ;;  %s1589_s4 = sshll.u32 %s2233_s3, 4  ;;  %s1590_s4 = int_to_ptr.vmem [resolvable:$true] %s1589_s4 }
 0x131   :  { %2185 = vmatpush3.bf16.msra.mxu1 %v2184_v23  ;;  %2155 = vmatprep.subr.bf16.mxu0 %v2154_v24  ;;  %s2208_s12 = scalar_lea.vmem %s1590_s4, 128  ;;  %p2213_p1 = scmp.lt.s32.totalorder %s1590_s4, %s1590_s4 }
 0x132   :  { %2187 = vmatprep.subr.bf16.mxu1 %v2186_v31  ;;  %p2209_p0 = scmp.ne.s32.totalorder %s1590_s4, %s2208_s12  ;;  %p2214_p2 = scmp.lt.s32.totalorder %s2208_s12, %s2208_s12 }
 0x134   :  { %2157 = vmatpush3.bf16.msra.mxu0 %v2156_v37  ;;  %p2215_p3 = por %p2214_p2, %p2213_p1 }
 0x135   :  { %2189 = vmatpush3.bf16.msra.mxu1 %v2188_v13  ;;  %2159 = vmatprep.subr.bf16.mxu0 %v2158_v39 }
 0x136   :  { %2191 = vmatprep.subr.bf16.mxu1 %v2190_v44  ;;  %p2216_p4 = pnand %p2215_p3, %p2209_p0 }
 0x138   :  { %2161 = vmatpush3.bf16.msra.mxu0 %v2160_v51 }
 0x139   :  { %2193 = vmatpush3.bf16.msra.mxu1 %v2192_v10  ;;  %2163 = vmatprep.subr.bf16.mxu0 %v2162_v38 }
 0x13a   :  { %2195 = vmatprep.subr.bf16.mxu1 %v2194_v58 }
 0x13c   :  { %2165 = vmatpush3.bf16.msra.mxu0 %v2164_v55 }
 0x13d   :  { %2197 = vmatpush3.bf16.msra.mxu1 %v2196_v56  ;;  %2167 = vmatprep.subr.bf16.mxu0 %v2166_v20 }
 0x13e   :  { %2199 = vmatprep.subr.bf16.mxu1 %v2198_v48 }
 0x140   :  { %2169 = vmatpush3.bf16.msra.mxu0 %v2168_v1 }
 0x141   :  { %2201 = vmatpush3.bf16.msra.mxu1 %v2200_v2  ;;  %2171 = vmatprep.subr.bf16.mxu0 %v2170_v26 }
 0x142   :  { %2203 = vmatprep.subr.bf16.mxu1 %v2202_v4 }
 0x144   :  { %2173 = vmatpush3.bf16.msra.mxu0 %v2172_v8 }
 0x145   :  { %2205 = vmatpush3.bf16.msra.mxu1 %v2204_v9 }
 0x147   :  { %1506 = vmatmul.mubr.f32.vlgmr.msra.gmra.mrb[14].mxu0 %v754_v17 }
 0x148   :  { %1576 = vmatmul.mubr.f32.vlgmr.msra.gmra.mrb[14].mxu1 %v756_v16 }
 0x1ba   :  { %v1638_v18 = vpop.f32.mrb[8].mxu0 }
 0x1bb   :  { %v1673_v21 = vpop.f32.mrb[8].mxu1  ;;  %v1639_v23 = vpop.f32.mrb[9].mxu0 }
 0x1bc   :  { %v1640_v24 = vadd.f32 %v1639_v23, %v1638_v18  ;;  %v1674_v25 = vpop.f32.mrb[9].mxu1 }
 0x1bd   :  { %v1675_v29 = vadd.f32 %v1674_v25, %v1673_v21 }
 0x1be   :  { %v1088_v30 = vadd.f32 %v1640_v24, %v1605_v22 }
 0x1c0   :  { %v1158_v31 = vadd.f32 %v1675_v29, %v1088_v30 }
 0x1da   :  { %v1708_v11 = vpop.f32.mrb[10].mxu0 }
 0x1db   :  { %v1743_v27 = vpop.f32.mrb[10].mxu1  ;;  %v1709_v32 = vpop.f32.mrb[11].mxu0 }
 0x1dc   :  { %v1710_v33 = vadd.f32 %v1709_v32, %v1708_v11  ;;  %v1744_v19 = vpop.f32.mrb[11].mxu1 }
 0x1dd   :  { %v1745_v35 = vadd.f32 %v1744_v19, %v1743_v27 }
 0x1de   :  { %v1228_v36 = vadd.f32 %v1710_v33, %v1158_v31 }
 0x1e0   :  { %v1298_v37 = vadd.f32 %v1745_v35, %v1228_v36 }
 0x1fa   :  { %v1778_v13 = vpop.f32.mrb[12].mxu0 }
 0x1fb   :  { %v1813_v39 = vpop.f32.mrb[12].mxu1  ;;  %v1779_v12 = vpop.f32.mrb[13].mxu0 }
 0x1fc   :  { %v1780_v40 = vadd.f32 %v1779_v12, %v1778_v13  ;;  %v1814_v42 = vpop.f32.mrb[13].mxu1 }
 0x1fd   :  { %v1815_v44 = vadd.f32 %v1814_v42, %v1813_v39 }
 0x1fe   :  { %v1368_v45 = vadd.f32 %v1780_v40, %v1298_v37 }
 0x200   :  { %v1438_v46 = vadd.f32 %v1815_v44, %v1368_v45 }
 0x21a   :  { %v1848_v47 = vpop.f32.mrb[14].mxu0 }
 0x21b   :  { %v1883_v50 = vpop.f32.mrb[14].mxu1  ;;  %v1849_v34 = vpop.f32.mrb[15].mxu0 }
 0x21c   :  { %v1850_v51 = vadd.f32 %v1849_v34, %v1848_v47  ;;  %v1884_v10 = vpop.f32.mrb[15].mxu1 }
 0x21d   :  { %v1885_v38 = vadd.f32 %v1884_v10, %v1883_v50 }
 0x21e   :  { %v1508_v6 = vadd.f32 %v1850_v51, %v1438_v46 }
 0x220   :  { %v1578_v52 = vadd.f32 %v1885_v38, %v1508_v6 }
 0x222   :  { %1582 = vst.msk [vmem:[#allocation2] sm:$0xff] %vm1581_vm1, %v1578_v52 }
 0x223   :  { %2219 = shalt.err (!%p2216_p4)
}
 0x224   :  { %s2220_s15 = scalar_lea.hbm %s3363_s5, 128 }
 0x225   :  { %p2221_p5 = scmp.ne.s32.totalorder %s3363_s5, %s2220_s15  ;;  %p2224_p6 = scmp.lt.u32.totalorder %s2220_s15, %s3363_s5 }
 0x227   :  { %p2226_p7 = pnand %p2224_p6, %p2221_p5 }
 0x229   :  { %2229 = shalt.err (!%p2226_p7)
}
 0x22a   :  { %1592 = dma.vmem_to_hbm [thread:$0]  %s1590_s4, 128, %s3363_s5, [#allocation3]  }
 0x22b   :  { %2230 = dma.done.wait [#allocation3], 128  }
 0x22c   :  { %2231 = vsyncadd [#allocation3], 4294967168 }
 0x22d   :  { %1596 = vsyncpa [#allocation3], 1 }

</bundles_post_ra>
